<compile_context>
chip_gen: v6e
topology: v6e:2x2x1
jax: 0.10.0
libtpu: 0.0.40
codegen_flags: <defaults>
</compile_context>

<pallas_src>
import functools

import jax
import jax.numpy as jnp
import numpy as np
from jax.experimental import pallas as pl
from jax.experimental.pallas import tpu as pltpu


def _round_up(x, m):
    return ((x + m - 1) // m) * m


def _cdiv(a, b):
    return -(-a // b)


def _vmem_capacity_bytes():
    try:
        return int(pltpu.get_tpu_info().vmem_capacity_bytes)
    except Exception:
        return 64 * 1024 * 1024  # conservative fallback (v7x per-TC VMEM)


def _device_kind():
    try:
        return jax.devices()[0].device_kind.lower()
    except Exception:
        return ""


def _select_tiles(batch, n_cand, n_hist, H1, H2, E, in_bytes, comp_bytes,
                  vmem_capacity):
    """Large candidate tiles, small balanced history chunks.

    Intermediates and per-step overhead scale with M = tile_c * hist_chunk, but
    hist_proj HBM traffic scales with the number of candidate tiles, so we favor a
    big tile_c and a small hist_chunk.  Both are 8-aligned; the history chunks are
    balanced so the last chunk is nearly full."""
    hist8 = _round_up(max(n_hist, 1), 8)
    target_hc = min(hist8, 32)
    n_hchunks = _cdiv(hist8, target_hc)
    hist_chunk = _round_up(_cdiv(hist8, n_hchunks), 8)

    cand8 = _round_up(max(n_cand, 1), 8)
    tile_c = min(cand8, 512)
    # Megacore balance: if batch alone cannot shard the parallel grid across the two
    # TensorCores (v7x), make sure there are at least two candidate tiles.
    if batch == 1 and cand8 >= 16:
        tile_c = min(tile_c, _round_up(_cdiv(cand8, 2), 8))

    budget = int(0.35 * vmem_capacity)

    def est(tc):
        m = tc * hist_chunk
        interm = m * (H1 * comp_bytes             # h1 (compute dtype)
                      + H2 * (4 + comp_bytes)     # layer-2 f32 pre-act + activated
                      + E * (4 + 4))              # layer-3 f32 pre-act + pooled temps
        io = 2 * (tc * H1 * in_bytes + hist_chunk * H1 * in_bytes + tc * E * 4)
        weights = 2 * ((H1 * H2 + H2 * E) * comp_bytes + (H2 + E) * 4)
        return interm + io + weights

    while tile_c > 8 and est(tile_c) > budget:
        tile_c = max(8, _round_up(tile_c // 2, 8))    # preserve (8,128) alignment
    # Balance candidate tiles to minimize padding (never increases tile_c).
    n_ctiles = _cdiv(cand8, tile_c)
    tile_c = _round_up(_cdiv(cand8, n_ctiles), 8)
    return tile_c, hist_chunk


def pointnet_body_kernel(cp_ref, hp_ref, w2_ref, b2_ref, w3_ref, b3_ref, o_ref,
                         *, n_hist_valid, needs_mask):
    # cp_ref : (1, tile_c, H1)      candidate-side layer-1 projection
    # hp_ref : (1, hist_chunk, H1)  history-side layer-1 projection (+ b1 folded)
    # o_ref  : (1, tile_c, E) f32   pooled features; doubles as running-max accumulator
    k = pl.program_id(2)
    nk = pl.num_programs(2)

    @pl.when(k == 0)
    def _():
        # Exact init: activation_at_end=relu guarantees every valid pooled value >= 0.
        o_ref[...] = jnp.zeros_like(o_ref)

    cp = cp_ref[0]                           # (tile_c, H1)
    hp = hp_ref[0]                           # (hist_chunk, H1)
    tile_c, hist_chunk = cp.shape[0], hp.shape[0]

    # Layer 1 (pre-activations hoisted to XLA): broadcast-add + relu in input dtype.
    h1 = jnp.maximum(cp[:, None, :] + hp[None, :, :], 0).astype(w2_ref.dtype)
    h1 = h1.reshape(tile_c * hist_chunk, h1.shape[-1])

    # Layer 2: relu(h1 @ W2 + b2), f32 accumulation on the MXU.
    h2 = jnp.dot(h1, w2_ref[...], preferred_element_type=jnp.float32) + b2_ref[...]
    h2 = jnp.maximum(h2, 0.0).astype(w3_ref.dtype)

    # Layer 3: relu(h2 @ W3 + b3)   (activation_at_end_pointnet=True).
    h3 = jnp.dot(h2, w3_ref[...], preferred_element_type=jnp.float32) + b3_ref[...]
    h3 = jnp.maximum(h3, 0.0).reshape(tile_c, hist_chunk, h3.shape[-1])

    def update(block):
        # Running max over the history axis (PointNet max pooling, keepdim=False).
        o_ref[0] = jnp.maximum(o_ref[0], jnp.max(block, axis=1))

    if needs_mask:
        # Only the last history chunk contains padded rows: gate the mask there and
        # build the predicate from a (hist_chunk, 1) iota (broadcast over E).
        @pl.when(k == nk - 1)
        def _():
            pos = (jax.lax.broadcasted_iota(jnp.int32, (hist_chunk, 1), 0)
                   + k * hist_chunk)
            update(jnp.where((pos < n_hist_valid)[None], h3, 0.0))

        @pl.when(k != nk - 1)
        def _():
            update(h3)
    else:
        update(h3)


def acqf_body_pointnet(x_hist, y_hist, x_cand, params, *,
                       compute_dtype=jnp.bfloat16, tile_c=None, hist_chunk=None):
    """Returns (B, n_cand, encoded_history_dim) pooled features (f32)."""
    w1c, w1h, b1, w2, b2, w3, b3 = params
    B, n_hist, d = x_hist.shape
    n_cand = x_cand.shape[1]
    H1, H2, E = w1c.shape[1], w2.shape[1], w3.shape[1]
    hi = jax.lax.Precision.HIGHEST

    # --- Hoisted layer-1 projections (contraction depth d / d+n_out is far too small
    #     for the MXU; also avoids recomputing hist_proj per candidate tile). b1 folded.
    xhy = jnp.concatenate([x_hist, y_hist], axis=-1)                  # (B, n_hist, d+n_out)
    cand_proj = jnp.einsum('bcd,dh->bch', x_cand, w1c, precision=hi)
    hist_proj = jnp.einsum('bnd,dh->bnh', xhy, w1h, precision=hi) + b1

    comp_bytes = jnp.dtype(compute_dtype).itemsize
    # v5e has no bf16 VALU: keep the layer-1 add in f32 there; bf16 on v6e/v7x.
    layer1_dtype = compute_dtype
    if comp_bytes < 4 and 'v5' in _device_kind():
        layer1_dtype = jnp.float32
    cand_proj = cand_proj.astype(layer1_dtype)
    hist_proj = hist_proj.astype(layer1_dtype)
    in_bytes = jnp.dtype(layer1_dtype).itemsize

    # --- Generation-aware tiling / VMEM limit.
    cap = _vmem_capacity_bytes()
    auto_tc, auto_hc = _select_tiles(B, n_cand, n_hist, H1, H2, E,
                                     in_bytes, comp_bytes, cap)
    tile_c = auto_tc if tile_c is None else tile_c
    hist_chunk = auto_hc if hist_chunk is None else hist_chunk
    vmem_limit = max(32 * 1024 * 1024, min(int(0.75 * cap), 100 * 1024 * 1024))

    # --- Pad candidate / history axes to tile multiples.
    n_cand_pad = _round_up(n_cand, tile_c)
    n_hist_pad = _round_up(n_hist, hist_chunk)
    if n_cand_pad != n_cand:
        cand_proj = jnp.pad(cand_proj, ((0, 0), (0, n_cand_pad - n_cand), (0, 0)))
    if n_hist_pad != n_hist:
        hist_proj = jnp.pad(hist_proj, ((0, 0), (0, n_hist_pad - n_hist), (0, 0)))
    needs_mask = n_hist_pad != n_hist

    w2c, w3c = w2.astype(compute_dtype), w3.astype(compute_dtype)
    b2f, b3f = b2.astype(jnp.float32), b3.astype(jnp.float32)

    grid = (B, n_cand_pad // tile_c, n_hist_pad // hist_chunk)
    kernel = functools.partial(pointnet_body_kernel,
                               n_hist_valid=n_hist, needs_mask=needs_mask)

    def const_spec(arr):
        # Constant block index -> tile stays VMEM-resident across grid steps.
        return pl.BlockSpec(arr.shape, lambda b, c, k: (0,) * arr.ndim)

    out = pl.pallas_call(
        kernel,
        out_shape=jax.ShapeDtypeStruct((B, n_cand_pad, E), jnp.float32),
        grid_spec=pltpu.PrefetchScalarGridSpec(
            num_scalar_prefetch=0,
            grid=grid,
            in_specs=[
                pl.BlockSpec((1, tile_c, H1), lambda b, c, k: (b, c, 0)),      # cand tile
                pl.BlockSpec((1, hist_chunk, H1), lambda b, c, k: (b, k, 0)),  # hist chunk
                const_spec(w2c), const_spec(b2f), const_spec(w3c), const_spec(b3f),
            ],
            # Output block index is constant across k: the tile stays resident in VMEM,
            # serves as the running-max accumulator and is written back once.
            out_specs=pl.BlockSpec((1, tile_c, E), lambda b, c, k: (b, c, 0)),
        ),
        compiler_params=pltpu.CompilerParams(
            dimension_semantics=("parallel", "parallel", "arbitrary"),
            vmem_limit_bytes=vmem_limit),
    )(cand_proj, hist_proj, w2c, b2f, w3c, b3f)

    return out[:, :n_cand, :]


def reference(x_hist, y_hist, x_cand, params):
    """Pure-JAX reference mirroring the PyTorch forward exactly (f32)."""
    w1c, w1h, b1, w2, b2, w3, b3 = params
    B, n_hist, d = x_hist.shape
    n_cand = x_cand.shape[1]
    n_out = y_hist.shape[-1]
    hi = jax.lax.Precision.HIGHEST
    xc_e = jnp.broadcast_to(x_cand[:, :, None, :], (B, n_cand, n_hist, d))
    xh_e = jnp.broadcast_to(x_hist[:, None, :, :], (B, n_cand, n_hist, d))
    yh_e = jnp.broadcast_to(y_hist[:, None, :, :], (B, n_cand, n_hist, n_out))
    nn_input = jnp.concatenate([xc_e, xh_e, yh_e], axis=-1)   # order: x_cand, x_hist, y_hist
    w1 = jnp.concatenate([w1c, w1h], axis=0)
    h = jnp.maximum(jnp.einsum('bcnk,kh->bcnh', nn_input, w1, precision=hi) + b1[0], 0.0)
    h = jnp.maximum(jnp.einsum('bcnk,kh->bcnh', h, w2, precision=hi) + b2[0], 0.0)
    h = jnp.maximum(jnp.einsum('bcnk,kh->bcnh', h, w3, precision=hi) + b3[0], 0.0)
    return jnp.max(h, axis=-2)                                 # max pool over n_hist


if __name__ == "__main__":
    # Small shapes consistent with the module's forward signature; n_hist=10 and
    # n_cand=20 deliberately exercise the history-padding mask and candidate padding.
    B, n_hist, n_cand, d, n_out = 2, 10, 20, 4, 1
    H1, H2, E = 128, 128, 256      # history_enc_hidden_dims=[128,128], encoded_history_dim=256

    key = jax.random.PRNGKey(0)
    ks = jax.random.split(key, 9)
    x_hist = jax.random.normal(ks[0], (B, n_hist, d), jnp.float32)
    y_hist = jax.random.normal(ks[1], (B, n_hist, n_out), jnp.float32)
    x_cand = jax.random.normal(ks[2], (B, n_cand, d), jnp.float32)

    # Deterministic nn.Linear-style parameter init.
    input_dim = 2 * d + n_out      # [x_cand, x_hist, y_hist] concatenated

    def lin_init(kw, kb, fan_in, fan_out):
        bound = 1.0 / np.sqrt(fan_in)
        w = jax.random.uniform(kw, (fan_in, fan_out), jnp.float32, -bound, bound)
        b = jax.random.uniform(kb, (1, fan_out), jnp.float32, -bound, bound)
        return w, b

    w1, b1 = lin_init(ks[3], ks[4], input_dim, H1)
    w2, b2 = lin_init(ks[5], ks[6], H1, H2)
    w3, b3 = lin_init(ks[7], ks[8], H2, E)
    w1c, w1h = w1[:d], w1[d:]      # split W1 into candidate / history row blocks
    params = (w1c, w1h, b1, w2, b2, w3, b3)

    # TODO(synk): hist_mask / cand_mask masked pooling and the off-by-default branches
    # (include_best_y, subtract_best_y, acqf_params, n_pointnets>1, layer_norm, dropout,
    # mean/sum pooling) are not implemented; this covers the default forward path only.
    # NOTE: the zero-init / zero-mask max pooling is exact only because the final
    # activation is ReLU (activation_at_end=True); changing that requires a -inf mask.

    ref = reference(x_hist, y_hist, x_cand, params)

    # Exact (f32 compute) path.
    out_f32 = jax.block_until_ready(
        acqf_body_pointnet(x_hist, y_hist, x_cand, params, compute_dtype=jnp.float32))
    np.testing.assert_allclose(np.asarray(out_f32), np.asarray(ref), rtol=1e-3, atol=1e-3)

    # Performance (bf16 layer-1 add + layer-2/3 operands, f32 accumulation) path.
    out_bf16 = jax.block_until_ready(
        acqf_body_pointnet(x_hist, y_hist, x_cand, params, compute_dtype=jnp.bfloat16))
    np.testing.assert_allclose(np.asarray(out_bf16), np.asarray(ref), rtol=5e-2, atol=5e-2)

    assert out_f32.shape == (B, n_cand, E)
    print("KERNEL_OK")
</pallas_src>

<mosaic_0001>
module attributes {stable_mosaic.version = 11 : i64} {
  func.func @pointnet_body_kernel(%arg0: i32, %arg1: i32, %arg2: i32, %arg3: memref<1x24x128xf32, #tpu.memory_space<vmem>>, %arg4: memref<1x16x128xf32, #tpu.memory_space<vmem>>, %arg5: memref<128x128xf32, #tpu.memory_space<vmem>>, %arg6: memref<1x128xf32, #tpu.memory_space<vmem>>, %arg7: memref<128x256xf32, #tpu.memory_space<vmem>>, %arg8: memref<1x256xf32, #tpu.memory_space<vmem>>, %arg9: memref<1x24x256xf32, #tpu.memory_space<vmem>>) attributes {dimension_semantics = [#tpu.dimension_semantics<parallel>, #tpu.dimension_semantics<parallel>, #tpu.dimension_semantics<arbitrary>], iteration_bounds = array<i64: 2, 1, 1>, scalar_prefetch = 0 : i64, scratch_operands = 0 : i64, tpu.core_type = #tpu.core_type<tc>, window_params = [{transform_indices = @transform_0, window_bounds = array<i64: 1, 24, 128>}, {transform_indices = @transform_1, window_bounds = array<i64: 1, 16, 128>}, {pipeline_mode = #tpu.pipeline_mode<synchronous>, transform_indices = @transform_2, window_bounds = array<i64: 128, 128>}, {pipeline_mode = #tpu.pipeline_mode<synchronous>, transform_indices = @transform_3, window_bounds = array<i64: 1, 128>}, {pipeline_mode = #tpu.pipeline_mode<synchronous>, transform_indices = @transform_4, window_bounds = array<i64: 128, 256>}, {pipeline_mode = #tpu.pipeline_mode<synchronous>, transform_indices = @transform_5, window_bounds = array<i64: 1, 256>}, {transform_indices = @transform_6, window_bounds = array<i64: 1, 24, 256>}]} {
    %c0_i32 = arith.constant 0 : i32
    %0 = arith.cmpi eq, %arg2, %c0_i32 : i32
    %1 = arith.extui %0 : i1 to i32
    %c0_i32_0 = arith.constant 0 : i32
    %2 = arith.cmpi ne, %1, %c0_i32_0 : i32
    scf.if %2 {
      %cst_22 = arith.constant 0.000000e+00 : f32
      %36 = vector.broadcast %cst_22 : f32 to vector<1x24x256xf32>
      %c0_23 = arith.constant 0 : index
      %c0_24 = arith.constant 0 : index
      %c0_25 = arith.constant 0 : index
      %37 = vector.load %arg9[%c0_23, %c0_24, %c0_25] : memref<1x24x256xf32, #tpu.memory_space<vmem>>, vector<1x24x256xf32>
      tpu.vector_store %arg9[%c0_23, %c0_24, %c0_25], %36 {strides = array<i32>} : memref<1x24x256xf32, #tpu.memory_space<vmem>>, vector<1x24x256xf32>,
    } else {
    }
    %c0 = arith.constant 0 : index
    %c0_1 = arith.constant 0 : index
    %c0_2 = arith.constant 0 : index
    %3 = vector.load %arg3[%c0, %c0_1, %c0_2] : memref<1x24x128xf32, #tpu.memory_space<vmem>>, vector<1x24x128xf32>
    %4 = vector.shape_cast %3 : vector<1x24x128xf32> to vector<24x128xf32>
    %c0_3 = arith.constant 0 : index
    %c0_4 = arith.constant 0 : index
    %c0_5 = arith.constant 0 : index
    %5 = vector.load %arg4[%c0_3, %c0_4, %c0_5] : memref<1x16x128xf32, #tpu.memory_space<vmem>>, vector<1x16x128xf32>
    %6 = vector.shape_cast %5 : vector<1x16x128xf32> to vector<16x128xf32>
    %7 = vector.shape_cast %4 : vector<24x128xf32> to vector<24x1x128xf32>
    %8 = vector.shape_cast %6 : vector<16x128xf32> to vector<1x16x128xf32>
    %9 = vector.broadcast %7 : vector<24x1x128xf32> to vector<24x16x128xf32>
    %10 = vector.broadcast %8 : vector<1x16x128xf32> to vector<24x16x128xf32>
    %11 = arith.addf %9, %10 : vector<24x16x128xf32>
    %cst = arith.constant 0.000000e+00 : f32
    %12 = vector.broadcast %cst : f32 to vector<24x16x128xf32>
    %13 = arith.maximumf %11, %12 : vector<24x16x128xf32>
    %14 = vector.shape_cast %13 : vector<24x16x128xf32> to vector<384x128xf32>
    %c0_6 = arith.constant 0 : index
    %c0_7 = arith.constant 0 : index
    %15 = vector.load %arg5[%c0_6, %c0_7] : memref<128x128xf32, #tpu.memory_space<vmem>>, vector<128x128xf32>
    %cst_8 = arith.constant dense<0.000000e+00> : vector<384x128xf32>
    %16 = tpu.matmul %14, %15, %cst_8 {dimension_numbers = #tpu.dot_dimension_numbers<[1], [0], [0], [1], [0, 0, 1, 1], [], []>} : vector<384x128xf32>, vector<128x128xf32>, vector<384x128xf32> -> vector<384x128xf32>
    %c0_9 = arith.constant 0 : index
    %c0_10 = arith.constant 0 : index
    %17 = vector.load %arg6[%c0_9, %c0_10] : memref<1x128xf32, #tpu.memory_space<vmem>>, vector<1x128xf32>
    %18 = vector.broadcast %17 : vector<1x128xf32> to vector<384x128xf32>
    %19 = arith.addf %16, %18 : vector<384x128xf32>
    %cst_11 = arith.constant 0.000000e+00 : f32
    %20 = vector.broadcast %cst_11 : f32 to vector<384x128xf32>
    %21 = arith.maximumf %19, %20 : vector<384x128xf32>
    %c0_12 = arith.constant 0 : index
    %c0_13 = arith.constant 0 : index
    %22 = vector.load %arg7[%c0_12, %c0_13] : memref<128x256xf32, #tpu.memory_space<vmem>>, vector<128x256xf32>
    %cst_14 = arith.constant dense<0.000000e+00> : vector<384x256xf32>
    %23 = tpu.matmul %21, %22, %cst_14 {dimension_numbers = #tpu.dot_dimension_numbers<[1], [0], [0], [1], [0, 0, 1, 1], [], []>} : vector<384x128xf32>, vector<128x256xf32>, vector<384x256xf32> -> vector<384x256xf32>
    %c0_15 = arith.constant 0 : index
    %c0_16 = arith.constant 0 : index
    %24 = vector.load %arg8[%c0_15, %c0_16] : memref<1x256xf32, #tpu.memory_space<vmem>>, vector<1x256xf32>
    %25 = vector.broadcast %24 : vector<1x256xf32> to vector<384x256xf32>
    %26 = arith.addf %23, %25 : vector<384x256xf32>
    %cst_17 = arith.constant 0.000000e+00 : f32
    %27 = vector.broadcast %cst_17 : f32 to vector<384x256xf32>
    %28 = arith.maximumf %26, %27 : vector<384x256xf32>
    %29 = vector.shape_cast %28 : vector<384x256xf32> to vector<24x16x256xf32>
    %c0_i32_18 = arith.constant 0 : i32
    %30 = arith.cmpi eq, %arg2, %c0_i32_18 : i32
    %31 = arith.extui %30 : i1 to i32
    %c0_i32_19 = arith.constant 0 : i32
    %32 = arith.cmpi ne, %31, %c0_i32_19 : i32
    scf.if %32 {
      %36 = tpu.iota {dimensions = array<i32: 0>} : vector<16x1xi32>
      %c16_i32 = arith.constant 16 : i32
      %37 = arith.muli %arg2, %c16_i32 : i32
      %38 = vector.broadcast %37 : i32 to vector<16x1xi32>
      %39 = arith.addi %36, %38 : vector<16x1xi32>
      %c10_i32 = arith.constant 10 : i32
      %40 = vector.broadcast %c10_i32 : i32 to vector<16x1xi32>
      %41 = arith.cmpi slt, %39, %40 : vector<16x1xi32>
      %42 = vector.shape_cast %41 : vector<16x1xi1> to vector<1x16x1xi1>
      %cst_22 = arith.constant 0.000000e+00 : f32
      %43 = vector.shape_cast %42 : vector<1x16x1xi1> to vector<1x16x1xi1>
      %44 = vector.broadcast %43 : vector<1x16x1xi1> to vector<24x16x256xi1>
      %45 = vector.broadcast %cst_22 : f32 to vector<24x16x256xf32>
      %46 = arith.select %44, %29, %45 : vector<24x16x256xi1>, vector<24x16x256xf32>
      %c0_23 = arith.constant 0 : index
      %c0_24 = arith.constant 0 : index
      %c0_25 = arith.constant 0 : index
      %47 = vector.load %arg9[%c0_23, %c0_24, %c0_25] : memref<1x24x256xf32, #tpu.memory_space<vmem>>, vector<1x24x256xf32>
      %48 = vector.shape_cast %47 : vector<1x24x256xf32> to vector<24x256xf32>
      %cst_26 = arith.constant dense<0xFF800000> : vector<24x256xf32>
      %49 = vector.multi_reduction <maximumf>, %46, %cst_26 [1] : vector<24x16x256xf32> to vector<24x256xf32>
      %50 = arith.maximumf %48, %49 : vector<24x256xf32>
      %c0_27 = arith.constant 0 : index
      %c0_28 = arith.constant 0 : index
      %c0_29 = arith.constant 0 : index
      %51 = vector.load %arg9[%c0_27, %c0_28, %c0_29] : memref<1x24x256xf32, #tpu.memory_space<vmem>>, vector<1x24x256xf32>
      %52 = vector.shape_cast %51 : vector<1x24x256xf32> to vector<24x256xf32>
      %53 = vector.shape_cast %50 : vector<24x256xf32> to vector<1x24x256xf32>
      tpu.vector_store %arg9[%c0_27, %c0_28, %c0_29], %53 {strides = array<i32>} : memref<1x24x256xf32, #tpu.memory_space<vmem>>, vector<1x24x256xf32>,
    } else {
    }
    %c0_i32_20 = arith.constant 0 : i32
    %33 = arith.cmpi ne, %arg2, %c0_i32_20 : i32
    %34 = arith.extui %33 : i1 to i32
    %c0_i32_21 = arith.constant 0 : i32
    %35 = arith.cmpi ne, %34, %c0_i32_21 : i32
    scf.if %35 {
      %c0_22 = arith.constant 0 : index
      %c0_23 = arith.constant 0 : index
      %c0_24 = arith.constant 0 : index
      %36 = vector.load %arg9[%c0_22, %c0_23, %c0_24] : memref<1x24x256xf32, #tpu.memory_space<vmem>>, vector<1x24x256xf32>
      %37 = vector.shape_cast %36 : vector<1x24x256xf32> to vector<24x256xf32>
      %cst_25 = arith.constant dense<0xFF800000> : vector<24x256xf32>
      %38 = vector.multi_reduction <maximumf>, %29, %cst_25 [1] : vector<24x16x256xf32> to vector<24x256xf32>
      %39 = arith.maximumf %37, %38 : vector<24x256xf32>
      %c0_26 = arith.constant 0 : index
      %c0_27 = arith.constant 0 : index
      %c0_28 = arith.constant 0 : index
      %40 = vector.load %arg9[%c0_26, %c0_27, %c0_28] : memref<1x24x256xf32, #tpu.memory_space<vmem>>, vector<1x24x256xf32>
      %41 = vector.shape_cast %40 : vector<1x24x256xf32> to vector<24x256xf32>
      %42 = vector.shape_cast %39 : vector<24x256xf32> to vector<1x24x256xf32>
      tpu.vector_store %arg9[%c0_26, %c0_27, %c0_28], %42 {strides = array<i32>} : memref<1x24x256xf32, #tpu.memory_space<vmem>>, vector<1x24x256xf32>,
    } else {
    }
    return
  }
  func.func @transform_0(%arg0: i32, %arg1: i32, %arg2: i32) -> (i32, i32, i32) {
    %c0_i32 = arith.constant 0 : i32
    %c0_i32_0 = arith.constant 0 : i32
    return %arg0, %arg1, %c0_i32 : i32, i32, i32
  }
  func.func @transform_1(%arg0: i32, %arg1: i32, %arg2: i32) -> (i32, i32, i32) {
    %c0_i32 = arith.constant 0 : i32
    %c0_i32_0 = arith.constant 0 : i32
    return %arg0, %arg2, %c0_i32 : i32, i32, i32
  }
  func.func @transform_2(%arg0: i32, %arg1: i32, %arg2: i32) -> (i32, i32) {
    %c0_i32 = arith.constant 0 : i32
    %c0_i32_0 = arith.constant 0 : i32
    %c0_i32_1 = arith.constant 0 : i32
    return %c0_i32, %c0_i32_0 : i32, i32
  }
  func.func @transform_3(%arg0: i32, %arg1: i32, %arg2: i32) -> (i32, i32) {
    %c0_i32 = arith.constant 0 : i32
    %c0_i32_0 = arith.constant 0 : i32
    %c0_i32_1 = arith.constant 0 : i32
    return %c0_i32, %c0_i32_0 : i32, i32
  }
  func.func @transform_4(%arg0: i32, %arg1: i32, %arg2: i32) -> (i32, i32) {
    %c0_i32 = arith.constant 0 : i32
    %c0_i32_0 = arith.constant 0 : i32
    %c0_i32_1 = arith.constant 0 : i32
    return %c0_i32, %c0_i32_0 : i32, i32
  }
  func.func @transform_5(%arg0: i32, %arg1: i32, %arg2: i32) -> (i32, i32) {
    %c0_i32 = arith.constant 0 : i32
    %c0_i32_0 = arith.constant 0 : i32
    %c0_i32_1 = arith.constant 0 : i32
    return %c0_i32, %c0_i32_0 : i32, i32
  }
  func.func @transform_6(%arg0: i32, %arg1: i32, %arg2: i32) -> (i32, i32, i32) {
    %c0_i32 = arith.constant 0 : i32
    %c0_i32_0 = arith.constant 0 : i32
    return %arg0, %arg1, %c0_i32 : i32, i32, i32
  }
}

</mosaic_0001>

<bundles_post_ra>
// kernel: tpu_custom_call.1
= control target key start
LH: loop header
LB: loop body
LE: loop exit
PB: predicated region body
PF: predicated region fallthrough
CT: control target
= control target key end

     0   :  { %s4310_s0 = inlined_call_operand.hbm [shape: f32[2,24,128], index: 0, kind: input, shape index: {}]   ;;  %s4311_s1 = inlined_call_operand.hbm [shape: f32[2,16,128], index: 1, kind: input, shape index: {}]   ;;  %s4312_s2 = inlined_call_operand.hbm [shape: f32[128,128], index: 2, kind: input, shape index: {}]   ;;  %s4313_s3 = inlined_call_operand.vmem [shape: f32[1,128], index: 3, kind: input, shape index: {}]   ;;  %s4314_s4 = inlined_call_operand.hbm [shape: f32[128,256], index: 4, kind: input, shape index: {}]   ;;  %s4315_s5 = inlined_call_operand.vmem [shape: f32[1,256], index: 5, kind: input, shape index: {}]   ;;  %s4316_s6 = inlined_call_operand.hbm [shape: f32[2,24,256], index: 6, kind: output, shape index: {}]  }
   0x1   :  { %4325 = sst [smem:[#allocation21_spill]] %s4310_s0 }
   0x2   :  { %4326 = sst [smem:[#allocation22_spill]] %s4312_s2 }
   0x3   :  { %4327 = sst [smem:[#allocation23_spill]] %s4314_s4 }
   0x4   :  { %11 = vsyncpa [#allocation3], 0 }
   0x5   :  { %13 = vsyncpa [#allocation3 + $0x1], 0 }
   0x6   :  { %14 = vsyncpa [#allocation6], 0 }
   0x7   :  { %16 = vsyncpa [#allocation6 + $0x1], 0 }
   0x8   :  { %17 = vsyncpa [#allocation9], 0 }
   0x9   :  { %18 = vsyncpa [#allocation4], 0 }
   0xa   :  { %20 = vsyncpa [#allocation4 + $0x1], 0  ;;  %s3376_s21 = smov 0   ;;  %s3378_s22 = smov 0  }
   0xb   :  { %s3380_s23 = smov 0   ;;  %s3382_s24 = smov 0  }
   0xc   :  { %s3384_s25 = smov 0   ;;  %s3386_s26 = smov 0  }
   0xd LB: > { %4328 = sst [smem:[#allocation16_spill]] %s3306_s21  ;;  %s3407_s27 = sadd.s32 4294967295, %s3326_s26   ;;  %s3326_s26 = sphi %s3386_s26, %s26_s26   ;;  %s3322_s25 = sphi %s3384_s25, %s4353_s25   ;;  %s3318_s24 = sphi %s3382_s24, %s4352_s24   ;;  %s3314_s23 = sphi %s3380_s23, %s4348_s23   ;;  %s3310_s22 = sphi %s3378_s22, %s4351_s22   ;;  %s3306_s21 = sphi %s3376_s21, %s4350_s21  }
   0xe   : > { %4329 = sst [smem:[#allocation17_spill]] %s3314_s23  ;;  %s2804_s28 = sadd.s32 4294967294, %s3326_s26  }
   0xf   : > { %p67_p0 = scmp.ne.s32.totalorder %s3310_s22, %s3306_s21  ;;  %p68_p1 = scmp.eq.s32.totalorder %s3407_s27, 0 }
  0x10   : > { %p205_p2 = scmp.eq.s32.totalorder %s3407_s27, 1  ;;  %p211_p3 = scmp.eq.s32.totalorder %s2804_s28, 1 }
  0x11   : > { %p3416_p4 = por %p68_p1, %p67_p0  ;;  %p2805_p5 = scmp.ge.s32.totalorder %s3326_s26, 1 }
  0x12   : > { %p3421_p6 = por %p211_p3, %p67_p0  ;;  %p218_p7 = scmp.lt.s32.totalorder %s3326_s26, 3 }
  0x13   : > { %s3328_s8 = smov [#allocation7]   ;;  %s3329_s11 = smov [#allocation8]  }
  0x14   : > { %s4331_s30 = scalar_select %p3421_p6, 1, 0 }
  0x15   : > { %p3426_p8 = pnand %p2805_p5, %p218_p7  ;;  %s230_s9 = sshll.u32 %s3328_s8, 4  ;;  %s231_s9 = int_to_ptr.vmem [resolvable:$true] %s230_s9 }
  0x16   : > { %4332 = sst [smem:[#allocation18_spill]] %s4331_s30  ;;  %s246_s12 = sshll.u32 %s3329_s11, 4  ;;  %s247_s12 = int_to_ptr.vmem [resolvable:$true] %s246_s12 }
  0x17   : > { %p3041_p9 = pneg %p3426_p8  ;;  %s3137_s13 = scalar_lea.vmem %s231_s9, 2048 }
  0x18   : > { %p3138_p13 = scmp.ne.s32.totalorder %s231_s9, %s3137_s13  ;;  %p3145_p5 = scmp.lt.s32.totalorder %s231_s9, %s231_s9 }
  0x19   : > { %p3435_p11 = pnand %p3041_p9, %p68_p1  ;;  %p3146_p7 = scmp.lt.s32.totalorder %s3137_s13, %s3137_s13 }
  0x1b   : > { %p3128_p12 = pneg %p3435_p11  ;;  %p3147_p10 = por %p3146_p7, %p3145_p5 }
  0x1d   : > { %p3140_p0 = pnand %p3138_p13, %p3128_p12 }
  0x1f   : > { %p3141_p3 = pneg %p3140_p0 }
  0x21   : > { %p3148_p9 = pnand %p3147_p10, %p3141_p3 }
  0x23   : > { %3151 = shalt.err (!%p3148_p9)
}
  0x24   : > { %s4317_s14 = smov 128   ;;  %s4319_s15 = smov 8  }
  0x25   : > { %s4335_s2 = sld [smem:[#allocation22_spill]]  ;;  %s3163_s18 = scalar_lea.vmem %s247_s12, 4096 }
  0x26   : > { %p3164_p13 = scmp.ne.s32.totalorder %s247_s12, %s3163_s18  ;;  %p3171_p10 = scmp.lt.s32.totalorder %s247_s12, %s247_s12 }
  0x27   : > { %p3172_p3 = scmp.lt.s32.totalorder %s3163_s18, %s3163_s18 }
  0x28   : > { %p3166_p0 = pnand %p3164_p13, %p3128_p12 }
  0x29   : > { %p3173_p7 = por %p3172_p3, %p3171_p10 }
  0x2a   : > { %p3167_p5 = pneg %p3166_p0 }
  0x2b   : > { %3044 = dma.hbm_to_vmem [thread:$0]  (!%p3435_p11), %s4335_s2, 2048, %s231_s9, [#allocation6], %s4317_s14, %s4317_s14, %s4319_s15  }
  0x2c   : > { %p3174_p9 = pnand %p3173_p7, %p3167_p5 }
  0x2e   : > { %3177 = shalt.err (!%p3174_p9)
}
  0x2f   : > { %s3332_s19 = smov 256   ;;  %s3333_s20 = smov 16  }
  0x30   : > { %s4336_s4 = sld [smem:[#allocation23_spill]]  ;;  %s45_s9 = sadd.s32 1, %s3322_s25 }
  0x31   : > { %s54_s11 = sadd.s32 1, %s3314_s23  ;;  %p47_p12 = scmp.ge.s32.totalorder %s45_s9, 2 }
  0x32   : > { %p61_p13 = scmp.ne.s32.totalorder %s3314_s23, %s3310_s22  ;;  %p62_p0 = scmp.eq.s32.totalorder %s3326_s26, 0 }
  0x33   : > { %p3061_p5 = scmp.lt.s32.totalorder %s3326_s26, 2  ;;  %s4355_s9 = smov (%p47_p12, %s45_s9), 0 }
  0x34   : > { %4337 = sst [smem:[#allocation19_spill]] %s4355_s9  ;;  %p63_p10 = por %p62_p0, %p61_p13 }
  0x35   : > { %p3470_p3 = por %p205_p2, %p61_p13  ;;  %s49_s10 = ssub.s32 %s3322_s25, %s4355_s9 }
  0x36   : > { %3047 = dma.hbm_to_vmem [thread:$0]  (!%p3435_p11), %s4336_s4, 4096, %s247_s12, [#allocation9], %s3332_s19, %s3332_s19, %s3333_s20  }
  0x37   : > { %s3477_s16 = sand.u32 1, %s3314_s23   ;;  %p52_p11 = scmp.eq.s32.totalorder %s49_s10, 0 }
  0x38   : > { %s3022_s12 = smul.u32 24, %s3477_s16  ;;  %p3480_p7 = pnand %p3061_p5, %p63_p10 }
  0x39   : > { %s3485_s18 = scalar_select %p52_p11, %s3314_s23, %s54_s11  }
  0x3a   : > { %s3023_s19 = smul.u32 384, %s3322_s25  ;;  %s267_s20 = scalar_lea.vmem [#allocation2], %s3022_s12 }
  0x3b   : > { %4340 = sst [smem:[#allocation20_spill]] %s3485_s18  ;;  %s276_s28 = sshll.u32 %s267_s20, 4  ;;  %s277_s28 = int_to_ptr.vmem [resolvable:$true] %s276_s28 }
  0x3c   : > { %s4341_s0 = sld [smem:[#allocation21_spill]]  ;;  %s264_s2 = scalar_lea.sflag [#allocation3], %s3477_s16 }
  0x3d   : > { %p3180_p2 = pneg %p3480_p7  ;;  %s3191_s10 = scalar_lea.vmem %s277_s28, 384 }
  0x3e   : > { %p3192_p9 = scmp.ne.s32.totalorder %s277_s28, %s3191_s10  ;;  %s3334_s4 = smov [#allocation2]  }
  0x3f   : > { %s3196_s11 = sshll.u32 %s3334_s4, 4  ;;  %s3197_s11 = int_to_ptr.vmem [resolvable:$false] %s3196_s11 }
  0x40   : > { %p3194_p12 = pnand %p3192_p9, %p3180_p2  ;;  %s3198_s9 = scalar_lea.vmem %s3197_s11, 768 }
  0x41   : > { %p3199_p0 = scmp.lt.s32.totalorder %s277_s28, %s3197_s11  ;;  %p3200_p5 = scmp.lt.s32.totalorder %s3198_s9, %s3191_s10 }
  0x42   : > { %s275_s15 = scalar_lea.hbm %s4341_s0, %s3023_s19  ;;  %p3195_p13 = pneg %p3194_p12 }
  0x43   : > { %p3201_p10 = por %p3200_p5, %p3199_p0 }
  0x45   : > { %p3202_p11 = pnand %p3201_p10, %p3195_p13 }
  0x47   : > { %3205 = shalt.err (!%p3202_p11)
}
  0x48   : > { %s4342_s14 = smov 8   ;;  %s4343_s12 = smov 128  }
  0x49   : > { %3051 = dma.hbm_to_vmem [thread:$0]  (!%p3480_p7), %s275_s15, 384, %s277_s28, %s264_s2, %s4343_s12, %s4343_s12, %s4342_s14  }
  0x4a   : > { %s286_s19 = sand.u32 1, %s3326_s26   ;;  %s2810_s20 = sshll.u32 %s3477_s16, 4 }
  0x4b   : > { %s2821_s4 = sshll.u32 %s3322_s25, 8  ;;  %s290_s8 = scalar_lea.vmem [#allocation5], %s2810_s20 }
  0x4c   : > { %s299_s0 = sshll.u32 %s290_s8, 4  ;;  %s298_s10 = scalar_lea.hbm %s4311_s1, %s2821_s4  ;;  %s300_s0 = int_to_ptr.vmem [resolvable:$true] %s299_s0 }
  0x4d   : > { %s287_s18 = scalar_lea.sflag [#allocation6], %s286_s19  ;;  %s3219_s23 = scalar_lea.vmem %s300_s0, 256 }
  0x4e   : > { %p3220_p9 = scmp.ne.s32.totalorder %s300_s0, %s3219_s23  ;;  %s3335_s30 = smov [#allocation5]  }
  0x4f   : > { %s3224_s21 = sshll.u32 %s3335_s30, 4  ;;  %s3225_s21 = int_to_ptr.vmem [resolvable:$false] %s3224_s21 }
  0x50   : > { %p3222_p12 = pnand %p3220_p9, %p3180_p2  ;;  %s3226_s2 = scalar_lea.vmem %s3225_s21, 512 }
  0x51   : > { %p3227_p0 = scmp.lt.s32.totalorder %s300_s0, %s3225_s21  ;;  %p3228_p5 = scmp.lt.s32.totalorder %s3226_s2, %s3219_s23 }
  0x52   : > { %p3223_p13 = pneg %p3222_p12 }
  0x53   : > { %p3229_p10 = por %p3228_p5, %p3227_p0 }
  0x55   : > { %p3230_p11 = pnand %p3229_p10, %p3223_p13 }
  0x57   : > { %3233 = shalt.err (!%p3230_p11)
}
  0x58   : > { %3054 = dma.hbm_to_vmem [thread:$0]  (!%p3480_p7), %s298_s10, 256, %s300_s0, %s287_s18, %s4343_s12, %s4343_s12, %s4342_s14  }
  0x59   : > { %311 = sbr.rel (%p3426_p8) target bundleno = 729 (0x2d9), region = 44  ;;  %s3519_s15 = sand.u32 (!%p3426_p8), 1, %s3310_s22  }
  0x5a   : > { %s3024_s21 = smul.u32 (!%p3426_p8), 24, %s3519_s15  ;;  %s314_s23 = scalar_lea.sflag (!%p3426_p8), [#allocation3], %s3519_s15 }
  0x5c   : > { %s3523_s30 = scalar_lea.vmem (!%p3426_p8), [#allocation2], %s3024_s21 }
  0x5e   : > { %3285 = dma.done.wait (%p3416_p4), %s314_s23, 384  }
  0x5f   : > { %3287 = vsyncadd (%p3416_p4), %s314_s23, 4294966912  ;;  %s322_s0 = sand.u32 1, %s3407_s27   ;;  %s2814_s7 = sshll.u32 %s3519_s15, 4 }
  0x60   : > { %s323_s16 = scalar_lea.sflag [#allocation6], %s322_s0  ;;  %s3531_s17 = scalar_lea.vmem [#allocation5], %s2814_s7 }
  0x61   : > { %3289 = dma.done.wait (%p3416_p4), %s323_s16, 256  }
  0x62   : > { %3291 = vsyncadd (%p3416_p4), %s323_s16, 4294967040 }
  0x63   : > { %3293 = dma.done.wait (%p68_p1), [#allocation6], 2048  }
  0x64   : > { %3295 = vsyncadd (%p68_p1), [#allocation6], 4294965248 }
  0x65   : > { %3297 = dma.done.wait (%p68_p1), [#allocation9], 4096  }
  0x66   : > { %3299 = vsyncadd (%p68_p1), [#allocation9], 4294963200  ;;  %v3336_v0 = vmov 1966171168   ;;  %v393_v2 = vlaneseq  ;;  %v767_v5 = vld [vmem:[#allocation7 + $0x78] sm:$0xff]  ;;  %v766_v6 = vld [vmem:[#allocation7 + $0x70] sm:$0xff] }
  0x67   : > { %v391_v1 = vunpack.c.l.s4 %v3336_v0  ;;  %2886 = vmatprep.subr.mxu0 %v767_v5  ;;  %v765_v7 = vld [vmem:[#allocation7 + $0x68] sm:$0xff]  ;;  %v764_v9 = vld [vmem:[#allocation7 + $0x60] sm:$0xff]  ;;  %v763_v11 = vld [vmem:[#allocation7 + $0x58] sm:$0xff]  ;;  %vm2123_vm1 = vcmask 1041409   ;;  %vm2125_vm2 = vcmask 1042434   ;;  %vm2127_vm3 = vcmask 1043459  }
  0x68   : > { %v3545_v4 = vshrl.u32 %v393_v2, 7  ;;  %2887 = vmatpush3.msra.mxu0 %v767_v5  ;;  %v381_v10 = vld [vmem:[%s3523_s30] sm:$0xff]  ;;  %v3559_v16 = vld [vmem:[%s3531_s17] sm:$0xff]  ;;  %v3564_v22 = vld [vmem:[#allocation8 + $0xf8] sm:$0xff]  ;;  %vm2129_vm4 = vcmask 1044484   ;;  %vm2131_vm5 = vcmask 1045509  }
  0x69   : > { %v392_v3 = vunpack.c.0.s8 %v391_v1  ;;  %2888 = vmatprep.subr.mxu0 %v766_v6  ;;  %v762_v14 = vld [vmem:[#allocation7 + $0x50] sm:$0xff]  ;;  %v761_v17 = vld [vmem:[#allocation7 + $0x48] sm:$0xff]  ;;  %v760_v19 = vld [vmem:[#allocation7 + $0x40] sm:$0xff]  ;;  %2990 = vmatprep.subr.mxu1 %v3564_v22  ;;  %v389_v25 = vcombine.high %v381_v10, %v381_v10  ;;  %vm2133_vm6 = vcmask 1046534   ;;  %vm2135_vm7 = vcmask 1047559   ;;  %s3025_s14 = smul.u32 48, %s3519_s15 }
  0x6a   : > { %2889 = vmatpush3.msra.mxu0 %v766_v6  ;;  %v3553_v13 = vsub.s32 0, %v3545_v4  ;;  %v759_v23 = vld [vmem:[#allocation7 + $0x38] sm:$0xff]  ;;  %v758_v26 = vld [vmem:[#allocation7 + $0x30] sm:$0xff]  ;;  %v3573_v30 = vld [vmem:[#allocation8 + $0xe8] sm:$0xff]  ;;  %s3026_s19 = smul.u32 768, %s3318_s24  ;;  %s2652_s11 = scalar_lea.sflag [#allocation4], %s3519_s15 }
  0x6b   : > { %v3548_v8 = vsub.s32 %v392_v3, %v3545_v4  ;;  %2890 = vmatprep.subr.mxu0 %v765_v7  ;;  %v3567_v27 = vld [vmem:[#allocation8 + $0xf0] sm:$0xff]  ;;  %v757_v31 = vld [vmem:[#allocation7 + $0x28] sm:$0xff]  ;;  %v3578_v33 = vld [vmem:[#allocation8 + $0xe0] sm:$0xff]  ;;  %s4078_s12 = scalar_lea.vmem [#allocation10], %s3025_s14  ;;  %s3338_s10 = smov [#allocation10]  }
  0x6c   : > { %2891 = vmatpush3.msra.mxu0 %v765_v7  ;;  %v3571_v29 = vld [vmem:[%s3523_s30 + $0x8] sm:$0xff]  ;;  %3006 = vmatpush1.msra.mxu1 %v3567_v27  ;;  %v756_v36 = vld [vmem:[#allocation7 + $0x20] sm:$0xff]  ;;  %v3588_v37 = vld [vmem:[%s3531_s17 + $0x8] sm:$0xff]  ;;  %s2668_s20 = sshll.u32 %s4078_s12, 4  ;;  %s4258_s24 = scalar_lea.hbm %s4316_s6, %s3026_s19  ;;  %s4261_s20 = int_to_ptr.vmem [resolvable:$true] %s2668_s20 }
  0x6d   : > { %v396_v12 = vrot.slane %v381_v10, %v3548_v8  ;;  %2892 = vmatprep.subr.mxu0 %v764_v9  ;;  %v438_v32 = vcombine.high %v3571_v29, %v3571_v29  ;;  %2991 = vmatprep.subr.mxu1 %v3573_v30  ;;  %v3582_v34 = vrot.slane %v389_v25, %v3548_v8  ;;  %v3584_v35 = vld [vmem:[#allocation8 + $0xd8] sm:$0xff]  ;;  %v3595_v41 = vld [vmem:[#allocation8 + $0xd0] sm:$0xff]  ;;  %v3598_v44 = vld [vmem:[#allocation8 + $0xc8] sm:$0xff]  ;;  %s3234_s9 = scalar_lea.vmem %s4261_s20, 768  ;;  %s3238_s2 = sshll.u32 %s3338_s10, 4  ;;  %s3239_s2 = int_to_ptr.vmem [resolvable:$false] %s3238_s2 }
  0x6e   : > { %2893 = vmatpush3.msra.mxu0 %v764_v9  ;;  %3007 = vmatpush1.msra.mxu1 %v3578_v33  ;;  %v383_v40 = vld [vmem:[%s3523_s30 + $0x10] sm:$0xff]  ;;  %v754_v47 = vld [vmem:[#allocation7 + $0x10] sm:$0xff]  ;;  %v753_v55 = vld [vmem:[#allocation7 + $0x8] sm:$0xff]  ;;  %p3235_p1 = scmp.ne.s32.totalorder %s4261_s20, %s3234_s9  ;;  %s3240_s21 = scalar_lea.vmem %s3239_s2, 1536 }
  0x6f   : > { %v3556_v15 = vrot.slane %v396_v12, %v3548_v8  ;;  %2894 = vmatprep.subr.mxu0 %v763_v11  ;;  %v404_v21 = vcombine.high %v396_v12, %v396_v12  ;;  %2992 = vmatprep.subr.mxu1 %v3584_v35  ;;  %v755_v42 = vld [vmem:[#allocation7 + $0x18] sm:$0xff]  ;;  %v452_v43 = vrot.slane %v438_v32, %v3548_v8  ;;  %v3608_v50 = vld [vmem:[#allocation8 + $0xc0] sm:$0xff]  ;;  %v3629_v2 = vld [vmem:[#allocation8 + $0xb0] sm:$0xff]  ;;  %p3241_p7 = scmp.lt.s32.totalorder %s4261_s20, %s3239_s2  ;;  %p3242_p2 = scmp.lt.s32.totalorder %s3240_s21, %s3234_s9 }
  0x70   : > { %2895 = vmatpush3.msra.mxu0 %v763_v11  ;;  %3008 = vmatpush1.msra.mxu1 %v3595_v41  ;;  %v3604_v46 = vrot.slane %v3582_v34, %v3548_v8  ;;  %v494_v48 = vrot.slane %v383_v40, %v3548_v8  ;;  %v487_v49 = vcombine.high %v383_v40, %v383_v40  ;;  %v3612_v54 = vld [vmem:[#allocation8 + $0xb8] sm:$0xff]  ;;  %v752_v61 = vld [vmem:[#allocation7] sm:$0xff]  ;;  %p3236_p4 = pnand %p3235_p1, %p3470_p3 }
  0x71   : > { %v539_v18 = vrot.slane %v3556_v15, %v3553_v13  ;;  %2896 = vmatprep.subr.mxu0 %v762_v14  ;;  %v426_v28 = vrot.slane %v404_v21, %v3548_v8  ;;  %v434_v38 = vcombine.high %v3556_v15, %v3556_v15  ;;  %2993 = vmatprep.subr.mxu1 %v3598_v44  ;;  %p3243_p9 = por %p3242_p2, %p3241_p7 }
  0x72   : > { %2897 = vmatpush3.msra.mxu0 %v762_v14  ;;  %3009 = vmatpush1.msra.mxu1 %v3608_v50  ;;  %v3616_v56 = vrot.slane %v452_v43, %v3548_v8  ;;  %v3621_v58 = vrot.slane %v3604_v46, %v3553_v13  ;;  %v405_v59 = vcombine.high %v3582_v34, %v3582_v34  ;;  %v3643_v14 = vld [vmem:[#allocation8 + $0xa8] sm:$0xff]  ;;  %p3237_p8 = pneg %p3236_p4 }
  0x73   : > { %v656_v20 = vadd.f32 %v539_v18, %v3559_v16  ;;  %2898 = vmatprep.subr.mxu0 %v761_v17  ;;  %v543_v39 = vrot.slane %v426_v28, %v3553_v13  ;;  %v657_v45 = vadd.f32 %v539_v18, %v3588_v37  ;;  %v547_v52 = vrot.slane %v434_v38, %v3553_v13  ;;  %v3673_v38 = vld [vmem:[#allocation8 + $0xa0] sm:$0xff] }
  0x74   : > { %2899 = vmatpush3.msra.mxu0 %v761_v17  ;;  %v436_v53 = vcombine.high %v426_v28, %v426_v28  ;;  %2994 = vmatprep.subr.mxu1 %v3612_v54  ;;  %v454_v60 = vcombine.high %v452_v43, %v452_v43  ;;  %v484_v63 = vcombine.high %v3616_v56, %v3616_v56  ;;  %v3684_v43 = vld [vmem:[#allocation8 + $0x98] sm:$0xff]  ;;  %p3244_p12 = pnand %p3243_p9, %p3237_p8 }
  0x75   : > { %v704_v24 = vmax.f32 %v656_v20, 0.0  ;;  %2900 = vmatprep.subr.mxu0 %v760_v19  ;;  %v658_v51 = vadd.f32 %v543_v39, %v3559_v16  ;;  %v705_v57 = vmax.f32 %v657_v45, 0.0  ;;  %v659_v62 = vadd.f32 %v543_v39, %v3588_v37  ;;  %3010 = vmatpush1.msra.mxu1 %v3629_v2 }
  0x76   : > { %2901 = vmatpush3.msra.mxu0 %v760_v19  ;;  %v510_v0 = vrot.slane %v494_v48, %v3548_v8  ;;  %v502_v1 = vcombine.high %v494_v48, %v494_v48  ;;  %v660_v5 = vadd.f32 %v547_v52, %v3559_v16  ;;  %v551_v6 = vrot.slane %v436_v53, %v3553_v13 }
  0x77   : > { %2918 = vmatprep.mubr.f32.mxu0 %v704_v24  ;;  %2902 = vmatprep.subr.mxu0 %v759_v23  ;;  %v706_v3 = vmax.f32 %v658_v51, 0.0  ;;  %v3634_v7 = vrot.slane %v487_v49, %v3548_v8  ;;  %v482_v9 = vrot.slane %v454_v60, %v3548_v8  ;;  %v3639_v10 = vrot.slane %v484_v63, %v3553_v13 }
  0x78   : > { %2903 = vmatpush3.msra.mxu0 %v759_v23  ;;  %v603_v11 = vrot.slane %v510_v0, %v3553_v13  ;;  %v524_v12 = vrot.slane %v502_v1, %v3548_v8  ;;  %v661_v15 = vadd.f32 %v547_v52, %v3588_v37  ;;  %v3647_v17 = vrot.slane %v405_v59, %v3548_v8 }
  0x79   : > { %2904 = vmatprep.subr.mxu0 %v758_v26  ;;  %v532_v18 = vcombine.high %v510_v0, %v510_v0  ;;  %2995 = vmatprep.subr.mxu1 %v3643_v14  ;;  %v707_v19 = vmax.f32 %v659_v62, 0.0  ;;  %v3651_v20 = vrot.slane %v482_v9, %v3553_v13  ;;  %v3655_v21 = vadd.f32 %v3639_v10, %v3559_v16 }
  0x7a   : > { %2905 = vmatpush3.msra.mxu0 %v758_v26  ;;  %v486_v23 = vcombine.high %v482_v9, %v482_v9  ;;  %v3658_v24 = vadd.f32 %v603_v11, %v3559_v16  ;;  %v3661_v25 = vadd.f32 %v603_v11, %v3588_v37  ;;  %v607_v26 = vrot.slane %v524_v12, %v3553_v13 }
  0x7b   : > { %2906 = vmatprep.subr.mxu0 %v757_v31  ;;  %v611_v28 = vrot.slane %v532_v18, %v3553_v13  ;;  %v662_v32 = vadd.f32 %v551_v6, %v3559_v16  ;;  %v3668_v34 = vadd.f32 %v3651_v20, %v3559_v16  ;;  %v435_v39 = vcombine.high %v3604_v46, %v3604_v46 }
  0x7c   : > { %2907 = vmatpush3.msra.mxu0 %v757_v31  ;;  %v708_v31 = vmax.f32 %v660_v5, 0.0  ;;  %v3678_v40 = vrot.slane %v486_v23, %v3553_v13  ;;  %3011 = vmatpush1.msra.mxu1 %v3673_v38  ;;  %v3690_v45 = vadd.f32 %v607_v26, %v3588_v37  ;;  %v663_v48 = vadd.f32 %v551_v6, %v3588_v37 }
  0x7d   : > { %2908 = vmatprep.subr.mxu0 %v756_v36  ;;  %v3693_v46 = vadd.f32 %v611_v28, %v3559_v16  ;;  %2996 = vmatprep.subr.mxu1 %v3684_v43  ;;  %v3705_v51 = vadd.f32 %v611_v28, %v3588_v37  ;;  %v710_v52 = vmax.f32 %v662_v32, 0.0  ;;  %v534_v53 = vcombine.high %v524_v12, %v524_v12 }
  0x7e   : > { %2909 = vmatpush3.msra.mxu0 %v756_v36  ;;  %v517_v36 = vrot.slane %v3634_v7, %v3548_v8  ;;  %v3702_v49 = vadd.f32 %v3678_v40, %v3559_v16  ;;  %v665_v59 = vadd.f32 %v3621_v58, %v3588_v37  ;;  %v3718_v60 = vrot.slane %v3571_v29, %v3548_v8 }
  0x7f   : > { %2910 = vmatprep.subr.mxu0 %v755_v42  ;;  %v615_v62 = vrot.slane %v534_v53, %v3553_v13  ;;  %v711_v29 = vmax.f32 %v663_v48, 0.0  ;;  %v563_v1 = vrot.slane %v435_v39, %v3553_v13  ;;  %v437_v5 = vcombine.high %v3647_v17, %v3647_v17  ;;  %v1141_v39 = vld [vmem:[#allocation8 + $0x68] sm:$0xff]  ;;  %v1140_v48 = vld [vmem:[#allocation8 + $0x60] sm:$0xff] }
  0x80   : > { %2911 = vmatpush3.msra.mxu0 %v755_v42  ;;  %v3681_v42 = vadd.f32 %v607_v26, %v3559_v16  ;;  %v3751_v18 = vrot.slane %v3718_v60, %v3548_v8 }
  0x81   : > { %2912 = vmatprep.subr.mxu0 %v754_v47  ;;  %v3739_v6 = vadd.f32 %v615_v62, %v3559_v16 }
  0x82   : > { %2913 = vmatpush3.msra.mxu0 %v754_v47  ;;  %v3696_v47 = vld [vmem:[#allocation8 + $0x90] sm:$0xff]  ;;  %v571_v53 = vrot.slane %v3751_v18, %v3553_v13 }
  0x83   : > { %2914 = vmatprep.subr.mxu0 %v753_v55  ;;  %3012 = vmatpush1.msra.mxu1 %v3696_v47 }
  0x84   : > { %2915 = vmatpush3.msra.mxu0 %v753_v55  ;;  %v619_v55 = vrot.slane %v517_v36, %v3553_v13 }
  0x85   : > { %2916 = vmatprep.subr.mxu0 %v752_v61 }
  0x86   : > { %2917 = vmatpush3.msra.mxu0 %v752_v61  ;;  %v503_v61 = vcombine.high %v3634_v7, %v3634_v7  ;;  %v3729_v63 = vadd.f32 %v619_v55, %v3588_v37  ;;  %v1144_v7 = vld [vmem:[#allocation8 + $0x80] sm:$0xff] }
  0x87   : > { %2919 = vmatmul.mubr.f32.vlgmr.msra.gmra.mxu0 %v705_v57  ;;  %1172 = vmatprep.subr.mxu0 %v3564_v22  ;;  %v559_v22 = vrot.slane %v3647_v17, %v3553_v13  ;;  %v3712_v57 = vld [vmem:[#allocation8 + $0x88] sm:$0xff] }
  0x88   : > { %2921 = vmatprep.mubr.f32.mxu0 %v706_v3  ;;  %1173 = vmatpush1.msra.mxu0 %v3567_v27  ;;  %v709_v27 = vmax.f32 %v661_v15, 0.0  ;;  %v713_v15 = vmax.f32 %v665_v59, 0.0  ;;  %v1139_v59 = vld [vmem:[#allocation8 + $0x58] sm:$0xff] }
  0x89   : > { %1174 = vmatprep.subr.mxu0 %v3573_v30  ;;  %v664_v30 = vadd.f32 %v3621_v58, %v3559_v16  ;;  %2997 = vmatprep.subr.mxu1 %v3712_v57  ;;  %v533_v58 = vcombine.high %v517_v36, %v517_v36  ;;  %v666_v0 = vadd.f32 %v559_v22, %v3559_v16  ;;  %v1142_v36 = vld [vmem:[#allocation8 + $0x70] sm:$0xff] }
  0x8a   : > { %1175 = vmatpush1.msra.mxu0 %v3578_v33  ;;  %v3726_v33 = vadd.f32 %v619_v55, %v3559_v16  ;;  %3013 = vmatpush1.msra.mxu1 %v1144_v7  ;;  %v667_v17 = vadd.f32 %v559_v22, %v3588_v37 }
  0x8b   : > { %2922 = vmatmul.mubr.f32.gmra.mxu0 %v707_v19  ;;  %1176 = vmatprep.subr.mxu0 %v3584_v35  ;;  %v531_v35 = vrot.slane %v503_v61, %v3548_v8  ;;  %v712_v3 = vmax.f32 %v664_v30, 0.0  ;;  %v627_v11 = vrot.slane %v533_v58, %v3553_v13  ;;  %v714_v28 = vmax.f32 %v666_v0, 0.0 }
  0x8c   : > { %2924 = vmatprep.mubr.f32.mxu0 %v708_v31  ;;  %1177 = vmatpush1.msra.mxu0 %v3595_v41  ;;  %v3742_v41 = vadd.f32 %v615_v62, %v3588_v37  ;;  %v668_v31 = vadd.f32 %v563_v1, %v3559_v16  ;;  %v669_v30 = vadd.f32 %v563_v1, %v3588_v37 }
  0x8d   : > { %1178 = vmatprep.subr.mxu0 %v3598_v44  ;;  %v623_v9 = vrot.slane %v531_v35, %v3553_v13  ;;  %v535_v12 = vcombine.high %v531_v35, %v531_v35  ;;  %v1143_v44 = vld [vmem:[#allocation8 + $0x78] sm:$0xff]  ;;  %v3763_v23 = vadd.f32 %v627_v11, %v3559_v16  ;;  %v3766_v26 = vadd.f32 %v627_v11, %v3588_v37 }
  0x8e   : > { %1179 = vmatpush1.msra.mxu0 %v3608_v50  ;;  %v453_v50 = vcombine.high %v3718_v60, %v3718_v60  ;;  %2998 = vmatprep.subr.mxu1 %v1143_v44  ;;  %v717_v60 = vmax.f32 %v669_v30, 0.0  ;;  %v672_v58 = vadd.f32 %v571_v53, %v3559_v16  ;;  %v673_v1 = vadd.f32 %v571_v53, %v3588_v37 }
  0x8f   : > { %2925 = vmatmul.mubr.f32.gmra.mxu0 %v709_v27  ;;  %1180 = vmatprep.subr.mxu0 %v3612_v54  ;;  %v3757_v19 = vadd.f32 %v623_v9, %v3559_v16  ;;  %v3760_v54 = vadd.f32 %v623_v9, %v3588_v37  ;;  %v631_v32 = vrot.slane %v535_v12, %v3553_v13  ;;  %v1135_v9 = vld [vmem:[#allocation8 + $0x38] sm:$0xff] }
  0x90   : > { %2927 = vmatprep.mubr.f32.mxu0 %v710_v52  ;;  %1181 = vmatpush1.msra.mxu0 %v3629_v2  ;;  %v567_v2 = vrot.slane %v437_v5, %v3553_v13  ;;  %v715_v52 = vmax.f32 %v667_v17, 0.0  ;;  %v475_v55 = vrot.slane %v453_v50, %v3548_v8  ;;  %v720_v35 = vmax.f32 %v672_v58, 0.0 }
  0x91   : > { %1182 = vmatprep.subr.mxu0 %v3643_v14  ;;  %3014 = vmatpush1.msra.mxu1 %v1142_v36  ;;  %v3774_v22 = vadd.f32 %v631_v32, %v3559_v16  ;;  %v3777_v27 = vadd.f32 %v631_v32, %v3588_v37  ;;  %v716_v14 = vmax.f32 %v668_v31, 0.0  ;;  %v721_v11 = vmax.f32 %v673_v1, 0.0 }
  0x92   : > { %1183 = vmatpush1.msra.mxu0 %v3673_v38  ;;  %2999 = vmatprep.subr.mxu1 %v1141_v39  ;;  %v670_v38 = vadd.f32 %v567_v2, %v3559_v16  ;;  %v671_v61 = vadd.f32 %v567_v2, %v3588_v37  ;;  %v575_v8 = vrot.slane %v475_v55, %v3553_v13  ;;  %v739_v58 = vmax.f32 %v3690_v45, 0.0 }
  0x93   : > { %2928 = vmatmul.mubr.f32.gmra.mxu0 %v711_v29  ;;  %1184 = vmatprep.subr.mxu0 %v3684_v43  ;;  %v1138_v43 = vld [vmem:[#allocation8 + $0x50] sm:$0xff]  ;;  %v1136_v29 = vld [vmem:[#allocation8 + $0x40] sm:$0xff]  ;;  %v587_v2 = vrot.slane %v3616_v56, %v3553_v13  ;;  %v683_v53 = vadd.f32 %v3651_v20, %v3588_v37  ;;  %v730_v56 = vmax.f32 %v3668_v34, 0.0  ;;  %v736_v34 = vmax.f32 %v3658_v24, 0.0 }
  0x94   : > { %2930 = vmatprep.mubr.f32.mxu0 %v712_v3  ;;  %3015 = vmatpush1.msra.mxu1 %v1140_v48  ;;  %v718_v62 = vmax.f32 %v670_v38, 0.0  ;;  %v719_v0 = vmax.f32 %v671_v61, 0.0  ;;  %v674_v3 = vadd.f32 %v575_v8, %v3559_v16  ;;  %v675_v12 = vadd.f32 %v575_v8, %v3588_v37  ;;  %v1133_v8 = vld [vmem:[#allocation8 + $0x28] sm:$0xff]  ;;  %v1130_v24 = vld [vmem:[#allocation8 + $0x10] sm:$0xff] }
  0x95   : > { %1185 = vmatpush1.msra.mxu0 %v3696_v47  ;;  %3000 = vmatprep.subr.mxu1 %v1139_v59  ;;  %v483_v47 = vcombine.high %v3751_v18, %v3751_v18  ;;  %v681_v30 = vadd.f32 %v587_v2, %v3588_v37  ;;  %v734_v61 = vmax.f32 %v3702_v49, 0.0  ;;  %v1131_v49 = vld [vmem:[#allocation8 + $0x18] sm:$0xff]  ;;  %v742_v45 = vmax.f32 %v3739_v6, 0.0 }
  0x96   : > { %1186 = vmatprep.subr.mxu0 %v3712_v57  ;;  %3016 = vmatpush1.msra.mxu1 %v1138_v43  ;;  %v1137_v57 = vld [vmem:[#allocation8 + $0x48] sm:$0xff]  ;;  %v723_v18 = vmax.f32 %v675_v12, 0.0  ;;  %v745_v6 = vmax.f32 %v3729_v63, 0.0  ;;  %v749_v1 = vmax.f32 %v3766_v26, 0.0 }
  0x97   : > { %2931 = vmatmul.mubr.f32.gmra.mxu0 %v713_v15  ;;  %3001 = vmatprep.subr.mxu1 %v1137_v57  ;;  %v579_v5 = vrot.slane %v483_v47, %v3553_v13  ;;  %v729_v38 = vmax.f32 %v681_v30, 0.0  ;;  %v1128_v47 = vld [vmem:[#allocation8] sm:$0xff] }
  0x98   : > { %2933 = vmatprep.mubr.f32.mxu0 %v714_v28  ;;  %1187 = vmatpush1.msra.mxu0 %v1144_v7  ;;  %v485_v7 = vcombine.high %v475_v55, %v475_v55  ;;  %v731_v55 = vmax.f32 %v683_v53, 0.0 }
  0x99   : > { %1188 = vmatprep.subr.mxu0 %v1143_v44  ;;  %3017 = vmatpush1.msra.mxu1 %v1136_v29  ;;  %v722_v44 = vmax.f32 %v674_v3, 0.0  ;;  %v676_v15 = vadd.f32 %v579_v5, %v3559_v16  ;;  %v677_v50 = vadd.f32 %v579_v5, %v3588_v37 }
  0x9a   : > { %1189 = vmatpush1.msra.mxu0 %v1142_v36  ;;  %3002 = vmatprep.subr.mxu1 %v1135_v9  ;;  %v583_v17 = vrot.slane %v485_v7, %v3553_v13 }
  0x9b   : > { %2934 = vmatmul.mubr.f32.gmra.mxu0 %v715_v52  ;;  %1190 = vmatprep.subr.mxu0 %v1141_v39  ;;  %v724_v28 = vmax.f32 %v676_v15, 0.0  ;;  %v725_v32 = vmax.f32 %v677_v50, 0.0 }
  0x9c   : > { %2936 = vmatprep.mubr.f32.mxu0 %v716_v14  ;;  %1191 = vmatpush1.msra.mxu0 %v1140_v48  ;;  %v678_v31 = vadd.f32 %v583_v17, %v3559_v16  ;;  %v679_v36 = vadd.f32 %v583_v17, %v3588_v37  ;;  %v680_v48 = vadd.f32 %v587_v2, %v3559_v16  ;;  %v732_v16 = vmax.f32 %v3655_v21, 0.0  ;;  %v1134_v21 = vld [vmem:[#allocation8 + $0x30] sm:$0xff] }
  0x9d   : > { %1192 = vmatprep.subr.mxu0 %v1139_v59  ;;  %v685_v59 = vadd.f32 %v3639_v10, %v3588_v37  ;;  %v738_v10 = vmax.f32 %v3681_v42, 0.0  ;;  %3018 = vmatpush1.msra.mxu1 %v1134_v21  ;;  %v1129_v42 = vld [vmem:[#allocation8 + $0x8] sm:$0xff] }
  0x9e   : > { %1193 = vmatpush1.msra.mxu0 %v1138_v43  ;;  %v726_v39 = vmax.f32 %v678_v31, 0.0  ;;  %v727_v52 = vmax.f32 %v679_v36, 0.0  ;;  %v728_v14 = vmax.f32 %v680_v48, 0.0  ;;  %3003 = vmatprep.subr.mxu1 %v1133_v8 }
  0x9f   : > { %2937 = vmatmul.mubr.f32.gmra.mxu0 %v717_v60  ;;  %1194 = vmatprep.subr.mxu0 %v1137_v57  ;;  %v733_v43 = vmax.f32 %v685_v59, 0.0  ;;  %v687_v60 = vadd.f32 %v3678_v40, %v3588_v37  ;;  %v740_v37 = vmax.f32 %v3693_v46, 0.0  ;;  %v1132_v40 = vld [vmem:[#allocation8 + $0x20] sm:$0xff]  ;;  %v743_v46 = vmax.f32 %v3742_v41, 0.0 }
  0xa0   : > { %2939 = vmatprep.mubr.f32.mxu0 %v718_v62  ;;  %1195 = vmatpush1.msra.mxu0 %v1136_v29  ;;  %v737_v62 = vmax.f32 %v3661_v25, 0.0  ;;  %v741_v25 = vmax.f32 %v3705_v51, 0.0  ;;  %v744_v57 = vmax.f32 %v3726_v33, 0.0  ;;  %v3337_v51 = vmov 0.0  }
  0xa1   : > { %1196 = vmatprep.subr.mxu0 %v1135_v9  ;;  %v735_v20 = vmax.f32 %v687_v60, 0.0  ;;  %3019 = vmatpush1.msra.mxu1 %v1132_v40  ;;  %v746_v29 = vmax.f32 %v3757_v19, 0.0  ;;  %v748_v41 = vmax.f32 %v3763_v23, 0.0  ;;  %v750_v33 = vmax.f32 %v3774_v22, 0.0  ;;  %v3835_v19 = vld [vmem:[%s4313_s3] ss:$0 sm:$0xff] }
  0xa2   : > { %1197 = vmatpush1.msra.mxu0 %v1134_v21  ;;  %3004 = vmatprep.subr.mxu1 %v1131_v49 }
  0xa3   : > { %2940 = vmatmul.mubr.f32.gmra.mxu0 %v719_v0  ;;  %1198 = vmatprep.subr.mxu0 %v1133_v8  ;;  %v747_v0 = vmax.f32 %v3760_v54, 0.0 }
  0xa4   : > { %2942 = vmatprep.mubr.f32.mxu0 %v720_v35  ;;  %1199 = vmatpush1.msra.mxu0 %v1132_v40  ;;  %v751_v35 = vmax.f32 %v3777_v27, 0.0 }
  0xa5   : > { %1200 = vmatprep.subr.mxu0 %v1131_v49  ;;  %3020 = vmatpush1.msra.mxu1 %v1130_v24 }
  0xa6   : > { %1201 = vmatpush1.msra.mxu0 %v1130_v24  ;;  %3005 = vmatprep.subr.mxu1 %v1129_v42 }
  0xa7   : > { %2943 = vmatmul.mubr.f32.gmra.mxu0 %v721_v11  ;;  %1202 = vmatprep.subr.mxu0 %v1129_v42 }
  0xa8   : > { %2945 = vmatprep.mubr.f32.mxu0 %v722_v44  ;;  %1203 = vmatpush1.msra.mxu0 %v1128_v47 }
  0xa9   : > { %3021 = vmatpush1.msra.mxu1 %v1128_v47  ;;  %1308 = vmatprep.mubr.f32.mxu1 %v3337_v51 }
  0xab   : > { %2946 = vmatmul.mubr.f32.gmra.mxu0 %v723_v18 }
  0xac   : > { %2948 = vmatprep.mubr.f32.mxu0 %v724_v28 }
  0xaf   : > { %2949 = vmatmul.mubr.f32.gmra.mxu0 %v725_v32 }
  0xb0   : > { %2951 = vmatprep.mubr.f32.mxu0 %v726_v39 }
  0xb3   : > { %2952 = vmatmul.mubr.f32.gmra.mxu0 %v727_v52 }
  0xb4   : > { %2954 = vmatprep.mubr.f32.mxu0 %v728_v14 }
  0xb7   : > { %2955 = vmatmul.mubr.f32.gmra.mxu0 %v729_v38 }
  0xb8   : > { %2957 = vmatprep.mubr.f32.mxu0 %v730_v56 }
  0xbb   : > { %2958 = vmatmul.mubr.f32.gmra.mxu0 %v731_v55 }
  0xbc   : > { %2960 = vmatprep.mubr.f32.mxu0 %v732_v16 }
  0xbf   : > { %2961 = vmatmul.mubr.f32.gmra.mxu0 %v733_v43 }
  0xc0   : > { %2963 = vmatprep.mubr.f32.mxu0 %v734_v61 }
  0xc3   : > { %2964 = vmatmul.mubr.f32.gmra.mxu0 %v735_v20 }
  0xc4   : > { %2966 = vmatprep.mubr.f32.mxu0 %v736_v34 }
  0xc7   : > { %2967 = vmatmul.mubr.f32.gmra.mxu0 %v737_v62 }
  0xc8   : > { %2969 = vmatprep.mubr.f32.mxu0 %v738_v10 }
  0xcb   : > { %2970 = vmatmul.mubr.f32.gmra.mxu0 %v739_v58 }
  0xcc   : > { %2972 = vmatprep.mubr.f32.mxu0 %v740_v37 }
  0xcf   : > { %2973 = vmatmul.mubr.f32.gmra.mxu0 %v741_v25 }
  0xd0   : > { %2975 = vmatprep.mubr.f32.mxu0 %v742_v45 }
  0xd3   : > { %2976 = vmatmul.mubr.f32.gmra.mxu0 %v743_v46 }
  0xd4   : > { %2978 = vmatprep.mubr.f32.mxu0 %v744_v57 }
  0xd7   : > { %2979 = vmatmul.mubr.f32.gmra.mxu0 %v745_v6 }
  0xd8   : > { %2981 = vmatprep.mubr.f32.mxu0 %v746_v29 }
  0xdb   : > { %2982 = vmatmul.mubr.f32.gmra.mxu0 %v747_v0 }
  0xdc   : > { %2984 = vmatprep.mubr.f32.mxu0 %v748_v41 }
  0xdf   : > { %2985 = vmatmul.mubr.f32.gmra.mxu0 %v749_v1 }
  0xe0   : > { %2987 = vmatprep.mubr.f32.mxu0 %v750_v33 }
  0xe3   : > { %2988 = vmatmul.mubr.f32.gmra.mxu0 %v751_v35 }
  0xe4   : > { %1236 = vmatprep.mubr.f32.mxu0 %v3337_v51 }
 0x147   : > { %v2920_v63 = vpop.f32.mrf.mxu0 }
 0x148   : > { %v847_v3 = vadd.f32 %v2920_v63, %v3835_v19 }
 0x149   : > { %v841_v54 = vpop.f32.mrf.mxu0 }
 0x14a   : > { %v842_v23 = vadd.f32 %v3835_v19, %v841_v54  ;;  %v1081_v7 = vmax.f32 %v847_v3, 0.0 }
 0x14b   : > { %v2923_v26 = vpop.f32.mrf.mxu0 }
 0x14c   : > { %v1080_v22 = vmax.f32 %v842_v23, 0.0  ;;  %v857_v44 = vadd.f32 %v2923_v26, %v3835_v19 }
 0x14d   : > { %v851_v5 = vpop.f32.mrf.mxu0 }
 0x14e   : > { %1237 = vmatmul.mubr.f32.vlgmr.msra.gmra.mxu0 %v1080_v22  ;;  %v852_v9 = vadd.f32 %v3835_v19, %v851_v5  ;;  %v1083_v50 = vmax.f32 %v857_v44, 0.0 }
 0x14f   : > { %v2926_v27 = vpop.f32.mrf.mxu0  ;;  %1242 = vmatprep.mubr.f32.mxu0 %v3337_v51 }
 0x150   : > { %v1082_v15 = vmax.f32 %v852_v9, 0.0  ;;  %v867_v32 = vadd.f32 %v2926_v27, %v3835_v19 }
 0x151   : > { %v861_v11 = vpop.f32.mrf.mxu0 }
 0x152   : > { %1243 = vmatmul.mubr.f32.gmra.mxu0 %v1081_v7  ;;  %v862_v28 = vadd.f32 %v3835_v19, %v861_v11  ;;  %v1085_v52 = vmax.f32 %v867_v32, 0.0 }
 0x153   : > { %v2929_v12 = vpop.f32.mrf.mxu0  ;;  %1248 = vmatprep.mubr.f32.mxu0 %v3337_v51 }
 0x154   : > { %v1084_v36 = vmax.f32 %v862_v28, 0.0  ;;  %v877_v56 = vadd.f32 %v2929_v12, %v3835_v19 }
 0x155   : > { %v871_v17 = vpop.f32.mrf.mxu0 }
 0x156   : > { %1249 = vmatmul.mubr.f32.gmra.mxu0 %v1082_v15  ;;  %v872_v30 = vadd.f32 %v3835_v19, %v871_v17  ;;  %v1087_v60 = vmax.f32 %v877_v56, 0.0 }
 0x157   : > { %v2932_v18 = vpop.f32.mrf.mxu0  ;;  %1254 = vmatprep.mubr.f32.mxu0 %v3337_v51 }
 0x158   : > { %v1086_v55 = vmax.f32 %v872_v30, 0.0  ;;  %v887_v10 = vadd.f32 %v2932_v18, %v3835_v19 }
 0x159   : > { %v881_v31 = vpop.f32.mrf.mxu0 }
 0x15a   : > { %1255 = vmatmul.mubr.f32.gmra.mxu0 %v1083_v50  ;;  %v882_v61 = vadd.f32 %v3835_v19, %v881_v31  ;;  %v1089_v40 = vmax.f32 %v887_v10, 0.0 }
 0x15b   : > { %v2935_v2 = vpop.f32.mrf.mxu0  ;;  %1260 = vmatprep.mubr.f32.mxu0 %v3337_v51 }
 0x15c   : > { %v1088_v21 = vmax.f32 %v882_v61, 0.0  ;;  %v897_v45 = vadd.f32 %v2935_v2, %v3835_v19 }
 0x15d   : > { %v891_v39 = vpop.f32.mrf.mxu0 }
 0x15e   : > { %1261 = vmatmul.mubr.f32.gmra.mxu0 %v1084_v36  ;;  %v892_v49 = vadd.f32 %v3835_v19, %v891_v39  ;;  %v1091_v29 = vmax.f32 %v897_v45, 0.0 }
 0x15f   : > { %v2938_v48 = vpop.f32.mrf.mxu0  ;;  %1266 = vmatprep.mubr.f32.mxu0 %v3337_v51 }
 0x160   : > { %v907_v59 = vadd.f32 %v2938_v48, %v3835_v19  ;;  %v1090_v47 = vmax.f32 %v892_v49, 0.0 }
 0x161   : > { %v901_v14 = vpop.f32.mrf.mxu0 }
 0x162   : > { %v902_v38 = vadd.f32 %v3835_v19, %v901_v14  ;;  %1267 = vmatmul.mubr.f32.gmra.mxu0 %v1085_v52  ;;  %v1093_v20 = vmax.f32 %v907_v59, 0.0 }
 0x163   : > { %v2941_v53 = vpop.f32.mrf.mxu0  ;;  %1272 = vmatprep.mubr.f32.mxu0 %v3337_v51 }
 0x164   : > { %v1092_v16 = vmax.f32 %v902_v38, 0.0  ;;  %v917_v58 = vadd.f32 %v2941_v53, %v3835_v19 }
 0x165   : > { %v911_v43 = vpop.f32.mrf.mxu0 }
 0x166   : > { %1273 = vmatmul.mubr.f32.gmra.mxu0 %v1086_v55  ;;  %1309 = vmatmul.mubr.f32.vlgmr.msra.gmra.mxu1 %v1092_v16  ;;  %v912_v34 = vadd.f32 %v3835_v19, %v911_v43  ;;  %v1095_v24 = vmax.f32 %v917_v58, 0.0 }
 0x167   : > { %1278 = vmatprep.mubr.f32.mxu0 %v3337_v51  ;;  %1314 = vmatprep.mubr.f32.mxu1 %v3337_v51  ;;  %v2944_v62 = vpop.f32.mrf.mxu0 }
 0x168   : > { %v1094_v8 = vmax.f32 %v912_v34, 0.0  ;;  %v927_v46 = vadd.f32 %v2944_v62, %v3835_v19 }
 0x169   : > { %v921_v37 = vpop.f32.mrf.mxu0 }
 0x16a   : > { %1279 = vmatmul.mubr.f32.gmra.mxu0 %v1087_v60  ;;  %1315 = vmatmul.mubr.f32.gmra.mxu1 %v1093_v20  ;;  %v922_v25 = vadd.f32 %v3835_v19, %v921_v37  ;;  %v1097_v0 = vmax.f32 %v927_v46, 0.0 }
 0x16b   : > { %1284 = vmatprep.mubr.f32.mxu0 %v3337_v51  ;;  %1320 = vmatprep.mubr.f32.mxu1 %v3337_v51  ;;  %v2947_v42 = vpop.f32.mrf.mxu0 }
 0x16c   : > { %v1096_v57 = vmax.f32 %v922_v25, 0.0  ;;  %v937_v33 = vadd.f32 %v2947_v42, %v3835_v19 }
 0x16d   : > { %v931_v6 = vpop.f32.mrf.mxu0 }
 0x16e   : > { %1285 = vmatmul.mubr.f32.gmra.mxu0 %v1088_v21  ;;  %1321 = vmatmul.mubr.f32.gmra.mxu1 %v1094_v8  ;;  %v932_v41 = vadd.f32 %v3835_v19, %v931_v6  ;;  %v1099_v54 = vmax.f32 %v937_v33, 0.0 }
 0x16f   : > { %1290 = vmatprep.mubr.f32.mxu0 %v3337_v51  ;;  %1326 = vmatprep.mubr.f32.mxu1 %v3337_v51  ;;  %v2950_v1 = vpop.f32.mrf.mxu0 }
 0x170   : > { %v1098_v35 = vmax.f32 %v932_v41, 0.0  ;;  %v947_v3 = vadd.f32 %v2950_v1, %v3835_v19 }
 0x171   : > { %v941_v63 = vpop.f32.mrf.mxu0 }
 0x172   : > { %1291 = vmatmul.mubr.f32.gmra.mxu0 %v1089_v40  ;;  %1327 = vmatmul.mubr.f32.gmra.mxu1 %v1095_v24  ;;  %v942_v23 = vadd.f32 %v3835_v19, %v941_v63  ;;  %v1101_v27 = vmax.f32 %v947_v3, 0.0 }
 0x173   : > { %1296 = vmatprep.mubr.f32.mxu0 %v3337_v51  ;;  %1332 = vmatprep.mubr.f32.mxu1 %v3337_v51  ;;  %v2953_v26 = vpop.f32.mrf.mxu0 }
 0x174   : > { %v1100_v22 = vmax.f32 %v942_v23, 0.0  ;;  %v957_v11 = vadd.f32 %v2953_v26, %v3835_v19 }
 0x175   : > { %v951_v5 = vpop.f32.mrf.mxu0 }
 0x176   : > { %1297 = vmatmul.mubr.f32.gmra.mxu0 %v1090_v47  ;;  %1333 = vmatmul.mubr.f32.gmra.mxu1 %v1096_v57  ;;  %v952_v7 = vadd.f32 %v3835_v19, %v951_v5  ;;  %v1103_v15 = vmax.f32 %v957_v11, 0.0 }
 0x177   : > { %1302 = vmatprep.mubr.f32.mxu0 %v3337_v51  ;;  %1338 = vmatprep.mubr.f32.mxu1 %v3337_v51  ;;  %v2956_v9 = vpop.f32.mrf.mxu0 }
 0x178   : > { %v1102_v12 = vmax.f32 %v952_v7, 0.0  ;;  %v967_v50 = vadd.f32 %v2956_v9, %v3835_v19 }
 0x179   : > { %v961_v44 = vpop.f32.mrf.mxu0 }
 0x17a   : > { %1303 = vmatmul.mubr.f32.gmra.mxu0 %v1091_v29  ;;  %1339 = vmatmul.mubr.f32.gmra.mxu1 %v1097_v0  ;;  %v962_v17 = vadd.f32 %v3835_v19, %v961_v44  ;;  %v1105_v2 = vmax.f32 %v967_v50, 0.0 }
 0x17b   : > { %1344 = vmatprep.mubr.f32.mxu1 %v3337_v51  ;;  %v2959_v18 = vpop.f32.mrf.mxu0 }
 0x17c   : > { %v1104_v28 = vmax.f32 %v962_v17, 0.0  ;;  %v977_v39 = vadd.f32 %v2959_v18, %v3835_v19 }
 0x17d   : > { %v971_v31 = vpop.f32.mrf.mxu0 }
 0x17e   : > { %1345 = vmatmul.mubr.f32.gmra.mxu1 %v1098_v35  ;;  %v972_v32 = vadd.f32 %v3835_v19, %v971_v31  ;;  %v1107_v30 = vmax.f32 %v977_v39, 0.0 }
 0x17f   : > { %1350 = vmatprep.mubr.f32.mxu1 %v3337_v51  ;;  %v2962_v36 = vpop.f32.mrf.mxu0 }
 0x180   : > { %v1106_v48 = vmax.f32 %v972_v32, 0.0  ;;  %v987_v53 = vadd.f32 %v2962_v36, %v3835_v19 }
 0x181   : > { %v981_v52 = vpop.f32.mrf.mxu0 }
 0x182   : > { %1351 = vmatmul.mubr.f32.gmra.mxu1 %v1099_v54  ;;  %v982_v14 = vadd.f32 %v3835_v19, %v981_v52  ;;  %v1109_v59 = vmax.f32 %v987_v53, 0.0  ;;  %v1168_v52 = vsub.s32 1, %v3545_v4 }
 0x183   : > { %1356 = vmatprep.mubr.f32.mxu1 %v3337_v51  ;;  %v2965_v38 = vpop.f32.mrf.mxu0 }
 0x184   : > { %v1108_v56 = vmax.f32 %v982_v14, 0.0  ;;  %v997_v60 = vadd.f32 %v2965_v38, %v3835_v19  ;;  %v3936_v38 = vadd.s32 8, %v3545_v4 }
 0x185   : > { %v991_v55 = vpop.f32.mrf.mxu0 }
 0x186   : > { %1357 = vmatmul.mubr.f32.gmra.mxu1 %v1100_v22  ;;  %v992_v16 = vadd.f32 %v3835_v19, %v991_v55  ;;  %v1111_v34 = vmax.f32 %v997_v60, 0.0  ;;  %vm1632_vm0 = vcmp.lt.s32.totalorder %v3936_v38, 10 }
 0x187   : > { %1362 = vmatprep.mubr.f32.mxu1 %v3337_v51  ;;  %v2968_v43 = vpop.f32.mrf.mxu0 }
 0x188   : > { %v1110_v61 = vmax.f32 %v992_v16, 0.0  ;;  %v1007_v21 = vadd.f32 %v2968_v43, %v3835_v19 }
 0x189   : > { %v1001_v20 = vpop.f32.mrf.mxu0 }
 0x18a   : > { %1363 = vmatmul.mubr.f32.gmra.mxu1 %v1101_v27  ;;  %v1002_v62 = vadd.f32 %v3835_v19, %v1001_v20  ;;  %v1113_v37 = vmax.f32 %v1007_v21, 0.0 }
 0x18b   : > { %1368 = vmatprep.mubr.f32.mxu1 %v3337_v51  ;;  %v2971_v10 = vpop.f32.mrf.mxu0 }
 0x18c   : > { %v1112_v58 = vmax.f32 %v1002_v62, 0.0  ;;  %v1017_v24 = vadd.f32 %v2971_v10, %v3835_v19 }
 0x18d   : > { %v1011_v8 = vpop.f32.mrf.mxu0 }
 0x18e   : > { %1369 = vmatmul.mubr.f32.gmra.mxu1 %v1102_v12  ;;  %v1012_v40 = vadd.f32 %v3835_v19, %v1011_v8  ;;  %v1115_v45 = vmax.f32 %v1017_v24, 0.0 }
 0x18f   : > { %1374 = vmatprep.mubr.f32.mxu1 %v3337_v51  ;;  %v2974_v49 = vpop.f32.mrf.mxu0 }
 0x190   : > { %v1114_v25 = vmax.f32 %v1012_v40, 0.0  ;;  %v1027_v57 = vadd.f32 %v2974_v49, %v3835_v19 }
 0x191   : > { %v1021_v42 = vpop.f32.mrf.mxu0 }
 0x192   : > { %1375 = vmatmul.mubr.f32.gmra.mxu1 %v1103_v15  ;;  %v1022_v47 = vadd.f32 %v3835_v19, %v1021_v42  ;;  %v1117_v0 = vmax.f32 %v1027_v57, 0.0 }
 0x193   : > { %1380 = vmatprep.mubr.f32.mxu1 %v3337_v51  ;;  %v2977_v46 = vpop.f32.mrf.mxu0 }
 0x194   : > { %v1116_v6 = vmax.f32 %v1022_v47, 0.0  ;;  %v1037_v33 = vadd.f32 %v2977_v46, %v3835_v19 }
 0x195   : > { %v1031_v29 = vpop.f32.mrf.mxu0 }
 0x196   : > { %1381 = vmatmul.mubr.f32.gmra.mxu1 %v1104_v28  ;;  %v1032_v41 = vadd.f32 %v3835_v19, %v1031_v29  ;;  %v1119_v54 = vmax.f32 %v1037_v33, 0.0 }
 0x197   : > { %1386 = vmatprep.mubr.f32.mxu1 %v3337_v51  ;;  %v2980_v1 = vpop.f32.mrf.mxu0 }
 0x198   : > { %v1118_v35 = vmax.f32 %v1032_v41, 0.0  ;;  %v1047_v3 = vadd.f32 %v2980_v1, %v3835_v19 }
 0x199   : > { %v1041_v63 = vpop.f32.mrf.mxu0 }
 0x19a   : > { %1387 = vmatmul.mubr.f32.gmra.mxu1 %v1105_v2  ;;  %v1042_v23 = vadd.f32 %v3835_v19, %v1041_v63  ;;  %v1121_v27 = vmax.f32 %v1047_v3, 0.0 }
 0x19b   : > { %1392 = vmatprep.mubr.f32.mxu1 %v3337_v51  ;;  %v2983_v26 = vpop.f32.mrf.mxu0 }
 0x19c   : > { %v1120_v22 = vmax.f32 %v1042_v23, 0.0  ;;  %v1057_v11 = vadd.f32 %v2983_v26, %v3835_v19 }
 0x19d   : > { %v1051_v5 = vpop.f32.mrf.mxu0 }
 0x19e   : > { %1393 = vmatmul.mubr.f32.gmra.mxu1 %v1106_v48  ;;  %v1052_v7 = vadd.f32 %v3835_v19, %v1051_v5  ;;  %v1123_v15 = vmax.f32 %v1057_v11, 0.0 }
 0x19f   : > { %1398 = vmatprep.mubr.f32.mxu1 %v3337_v51  ;;  %v2986_v9 = vpop.f32.mrf.mxu0 }
 0x1a0   : > { %v1122_v12 = vmax.f32 %v1052_v7, 0.0  ;;  %v1067_v50 = vadd.f32 %v2986_v9, %v3835_v19 }
 0x1a1   : > { %v1061_v44 = vpop.f32.mrf.mxu0 }
 0x1a2   : > { %1399 = vmatmul.mubr.f32.gmra.mxu1 %v1107_v30  ;;  %v1062_v17 = vadd.f32 %v3835_v19, %v1061_v44  ;;  %v1125_v2 = vmax.f32 %v1067_v50, 0.0  ;;  %v1160_v30 = vld [vmem:[%s4315_s5] sm:$0x3] }
 0x1a3   : > { %1404 = vmatprep.mubr.f32.mxu1 %v3337_v51  ;;  %v2989_v18 = vpop.f32.mrf.mxu0 }
 0x1a4   : > { %v1124_v28 = vmax.f32 %v1062_v17, 0.0  ;;  %v1077_v36 = vadd.f32 %v2989_v18, %v3835_v19 }
 0x1a5   : > { %v1071_v31 = vpop.f32.mrf.mxu0 }
 0x1a6   : > { %1405 = vmatmul.mubr.f32.gmra.mxu1 %v1108_v56  ;;  %v1072_v32 = vadd.f32 %v3835_v19, %v1071_v31  ;;  %v1127_v48 = vmax.f32 %v1077_v36, 0.0  ;;  %v3939_v56 = vrot.slane %v1160_v30, %v3553_v13  ;;  %v3941_v19 = vrot.slane %v1160_v30, %v1168_v52 }
 0x1a7   : > { %1410 = vmatprep.mubr.f32.mxu1 %v3337_v51 }
 0x1a8   : > { %v1126_v39 = vmax.f32 %v1072_v32, 0.0 }
 0x1aa   : > { %1411 = vmatmul.mubr.f32.gmra.mxu1 %v1109_v59 }
 0x1ab   : > { %1416 = vmatprep.mubr.f32.mxu1 %v3337_v51 }
 0x1ae   : > { %1417 = vmatmul.mubr.f32.gmra.mxu1 %v1110_v61 }
 0x1af   : > { %1422 = vmatprep.mubr.f32.mxu1 %v3337_v51 }
 0x1b2   : > { %1423 = vmatmul.mubr.f32.gmra.mxu1 %v1111_v34 }
 0x1b3   : > { %1428 = vmatprep.mubr.f32.mxu1 %v3337_v51 }
 0x1b6   : > { %1429 = vmatmul.mubr.f32.gmra.mxu1 %v1112_v58 }
 0x1b7   : > { %1434 = vmatprep.mubr.f32.mxu1 %v3337_v51 }
 0x1ba   : > { %1435 = vmatmul.mubr.f32.gmra.mxu1 %v1113_v37 }
 0x1bb   : > { %1440 = vmatprep.mubr.f32.mxu1 %v3337_v51 }
 0x1be   : > { %1441 = vmatmul.mubr.f32.gmra.mxu1 %v1114_v25 }
 0x1bf   : > { %1446 = vmatprep.mubr.f32.mxu1 %v3337_v51 }
 0x1c2   : > { %1447 = vmatmul.mubr.f32.gmra.mxu1 %v1115_v45 }
 0x1c3   : > { %1452 = vmatprep.mubr.f32.mxu1 %v3337_v51 }
 0x1c6   : > { %1453 = vmatmul.mubr.f32.gmra.mxu1 %v1116_v6 }
 0x1c7   : > { %1458 = vmatprep.mubr.f32.mxu1 %v3337_v51 }
 0x1ca   : > { %1459 = vmatmul.mubr.f32.gmra.mxu1 %v1117_v0 }
 0x1cb   : > { %1464 = vmatprep.mubr.f32.mxu1 %v3337_v51 }
 0x1ce   : > { %1465 = vmatmul.mubr.f32.gmra.mxu1 %v1118_v35 }
 0x1cf   : > { %1470 = vmatprep.mubr.f32.mxu1 %v3337_v51 }
 0x1d2   : > { %1471 = vmatmul.mubr.f32.gmra.mxu1 %v1119_v54 }
 0x1d3   : > { %1476 = vmatprep.mubr.f32.mxu1 %v3337_v51 }
 0x1d6   : > { %1477 = vmatmul.mubr.f32.gmra.mxu1 %v1120_v22 }
 0x1d7   : > { %1482 = vmatprep.mubr.f32.mxu1 %v3337_v51 }
 0x1da   : > { %1483 = vmatmul.mubr.f32.gmra.mxu1 %v1121_v27 }
 0x1db   : > { %1488 = vmatprep.mubr.f32.mxu1 %v3337_v51 }
 0x1de   : > { %1489 = vmatmul.mubr.f32.gmra.mxu1 %v1122_v12 }
 0x1df   : > { %1494 = vmatprep.mubr.f32.mxu1 %v3337_v51 }
 0x1e2   : > { %1495 = vmatmul.mubr.f32.gmra.mxu1 %v1123_v15 }
 0x1e3   : > { %1500 = vmatprep.mubr.f32.mxu1 %v3337_v51 }
 0x1e6   : > { %1501 = vmatmul.mubr.f32.gmra.mxu1 %v1124_v28 }
 0x1e7   : > { %1506 = vmatprep.mubr.f32.mxu1 %v3337_v51 }
 0x1ea   : > { %1507 = vmatmul.mubr.f32.gmra.mxu1 %v1125_v2 }
 0x1eb   : > { %1512 = vmatprep.mubr.f32.mxu1 %v3337_v51 }
 0x1ee   : > { %1513 = vmatmul.mubr.f32.gmra.mxu1 %v1126_v39 }
 0x1ef   : > { %1518 = vmatprep.mubr.f32.mxu1 %v3337_v51 }
 0x1f2   : > { %1519 = vmatmul.mubr.f32.gmra.mxu1 %v1127_v48 }
 0x20e   : > { %v1238_v14 = vpop.f32.mrf.mxu0 }
 0x20f   : > { %v1239_v16 = vadd.f32 %v1238_v14, %v3939_v56 }
 0x210   : > { %v1240_v53 = vpop.f32.mrf.mxu0 }
 0x211   : > { %v1241_v43 = vadd.f32 %v1240_v53, %v3941_v19  ;;  %v1525_v62 = vmax.f32 %v1239_v16, 0.0 }
 0x212   : > { %v1244_v55 = vpop.f32.mrf.mxu0 }
 0x213   : > { %v1245_v51 = vadd.f32 %v1244_v55, %v3939_v56  ;;  %v1526_v10 = vmax.f32 %v1241_v43, 0.0 }
 0x214   : > { %v1246_v59 = vpop.f32.mrf.mxu0 }
 0x215   : > { %v1527_v60 = vmax.f32 %v1245_v51, 0.0  ;;  %v1247_v4 = vadd.f32 %v1246_v59, %v3941_v19 }
 0x216   : > { %v1250_v61 = vpop.f32.mrf.mxu0 }
 0x217   : > { %v1528_v20 = vmax.f32 %v1247_v4, 0.0  ;;  %v1639_v13 = vsel %vm1632_vm0, %v1527_v60, 0.0  ;;  %v1251_v58 = vadd.f32 %v1250_v61, %v3939_v56 }
 0x218   : > { %v1252_v34 = vpop.f32.mrf.mxu0  ;;  %v1739_v37 = vmax.f32 %v1525_v62, %v1639_v13 }
 0x219   : > { %v1640_v21 = vsel %vm1632_vm0, %v1528_v20, 0.0  ;;  %v1253_v24 = vadd.f32 %v1252_v34, %v3941_v19  ;;  %v1529_v47 = vmax.f32 %v1251_v58, 0.0 }
 0x21a   : > { %v1256_v8 = vpop.f32.mrf.mxu0  ;;  %v1746_v40 = vmax.f32 %v1526_v10, %v1640_v21  ;;  %v1740_v57 = vrot.slane %v1739_v37, 4 }
 0x21b   : > { %v1257_v49 = vadd.f32 %v1256_v8, %v3939_v56  ;;  %v1530_v41 = vmax.f32 %v1253_v24, 0.0 }
 0x21c   : > { %v1258_v25 = vpop.f32.mrf.mxu0  ;;  %v1747_v6 = vrot.slane %v1746_v40, 4  ;;  %v1741_v3 = vmax.f32 %v1739_v37, %v1740_v57 }
 0x21d   : > { %v1531_v42 = vmax.f32 %v1257_v49, 0.0  ;;  %v1259_v45 = vadd.f32 %v1258_v25, %v3941_v19 }
 0x21e   : > { %v1262_v46 = vpop.f32.mrf.mxu0  ;;  %v1748_v22 = vmax.f32 %v1746_v40, %v1747_v6  ;;  %v1742_v28 = vrot.slane %v1741_v3, 2 }
 0x21f   : > { %v1643_v29 = vsel %vm1632_vm0, %v1531_v42, 0.0  ;;  %v1532_v0 = vmax.f32 %v1259_v45, 0.0  ;;  %v1263_v23 = vadd.f32 %v1262_v46, %v3939_v56 }
 0x220   : > { %v1753_v1 = vmax.f32 %v1529_v47, %v1643_v29  ;;  %v1264_v33 = vpop.f32.mrf.mxu0  ;;  %v1749_v31 = vrot.slane %v1748_v22, 2  ;;  %v1743_v4 = vmax.f32 %v1741_v3, %v1742_v28 }
 0x221   : > { %v1644_v35 = vsel %vm1632_vm0, %v1532_v0, 0.0  ;;  %v1265_v9 = vadd.f32 %v1264_v33, %v3941_v19  ;;  %v1533_v17 = vmax.f32 %v1263_v23, 0.0 }
 0x222   : > { %v1754_v63 = vrot.slane %v1753_v1, 4  ;;  %v1760_v54 = vmax.f32 %v1530_v41, %v1644_v35  ;;  %v1268_v26 = vpop.f32.mrf.mxu0  ;;  %v1750_v61 = vmax.f32 %v1748_v22, %v1749_v31 }
 0x223   : > { %v1269_v5 = vadd.f32 %v1268_v26, %v3939_v56  ;;  %v1534_v39 = vmax.f32 %v1265_v9, 0.0 }
 0x224   : > { %v1755_v27 = vmax.f32 %v1753_v1, %v1754_v63  ;;  %v1761_v7 = vrot.slane %v1760_v54, 4  ;;  %v1270_v11 = vpop.f32.mrf.mxu0  ;;  %v1744_v1 = vrot.slane %v1743_v4, 1  ;;  %v1751_v26 = vrot.slane %v1750_v61, 1 }
 0x225   : > { %v1535_v12 = vmax.f32 %v1269_v5, 0.0  ;;  %v1271_v44 = vadd.f32 %v1270_v11, %v3941_v19 }
 0x226   : > { %v1762_v15 = vmax.f32 %v1760_v54, %v1761_v7  ;;  %v1274_v18 = vpop.f32.mrf.mxu0  ;;  %v1310_v50 = vpop.f32.mrf.mxu1  ;;  %v1756_v36 = vrot.slane %v1755_v27, 2 }
 0x227   : > { %v1647_v2 = vsel %vm1632_vm0, %v1535_v12, 0.0  ;;  %v1536_v32 = vmax.f32 %v1271_v44, 0.0  ;;  %v1275_v53 = vadd.f32 %v1274_v18, %v3939_v56  ;;  %v1311_v16 = vadd.f32 %v1310_v50, %v3939_v56 }
 0x228   : > { %v1767_v48 = vmax.f32 %v1533_v17, %v1647_v2  ;;  %v1276_v52 = vpop.f32.mrf.mxu0  ;;  %v1312_v30 = vpop.f32.mrf.mxu1  ;;  %v1763_v55 = vrot.slane %v1762_v15, 2  ;;  %v1757_v34 = vmax.f32 %v1755_v27, %v1756_v36 }
 0x229   : > { %v1648_v14 = vsel %vm1632_vm0, %v1536_v32, 0.0  ;;  %v1277_v21 = vadd.f32 %v1276_v52, %v3941_v19  ;;  %v1537_v37 = vmax.f32 %v1275_v53, 0.0  ;;  %v1549_v45 = vmax.f32 %v1311_v16, 0.0 }
 0x22a   : > { %v1768_v51 = vrot.slane %v1767_v48, 4  ;;  %v1774_v59 = vmax.f32 %v1534_v39, %v1648_v14  ;;  %v1280_v43 = vpop.f32.mrf.mxu0  ;;  %v1316_v60 = vpop.f32.mrf.mxu1  ;;  %v1764_v25 = vmax.f32 %v1762_v15, %v1763_v55  ;;  %v1313_v47 = vadd.f32 %v1312_v30, %v3941_v19 }
 0x22b   : > { %v1281_v20 = vadd.f32 %v1280_v43, %v3939_v56  ;;  %v1317_v13 = vadd.f32 %v1316_v60, %v3939_v56  ;;  %v1538_v35 = vmax.f32 %v1277_v21, 0.0  ;;  %v1758_v27 = vrot.slane %v1757_v34, 1 }
 0x22c   : > { %v1769_v62 = vmax.f32 %v1767_v48, %v1768_v51  ;;  %v1775_v10 = vrot.slane %v1774_v59, 4  ;;  %v1282_v58 = vpop.f32.mrf.mxu0  ;;  %v1318_v8 = vpop.f32.mrf.mxu1  ;;  %v1765_v15 = vrot.slane %v1764_v25, 1  ;;  %v1550_v17 = vmax.f32 %v1313_v47, 0.0 }
 0x22d   : > { %v1539_v40 = vmax.f32 %v1281_v20, 0.0  ;;  %v1551_v49 = vmax.f32 %v1317_v13, 0.0  ;;  %v1283_v24 = vadd.f32 %v1282_v58, %v3941_v19  ;;  %v1319_v41 = vadd.f32 %v1318_v8, %v3941_v19 }
 0x22e   : > { %v1776_v42 = vmax.f32 %v1774_v59, %v1775_v10  ;;  %v1286_v46 = vpop.f32.mrf.mxu0  ;;  %v1322_v57 = vpop.f32.mrf.mxu1  ;;  %v1770_v33 = vrot.slane %v1769_v62, 2  ;;  %v1745_v30 = vmax.f32 %v1743_v4, %v1744_v1  ;;  %v1752_v59 = vmax.f32 %v1750_v61, %v1751_v26 }
 0x22f   : > { %v1651_v6 = vsel %vm1632_vm0, %v1539_v40, 0.0  ;;  %v1663_v29 = vsel %vm1632_vm0, %v1551_v49, 0.0  ;;  %v1540_v0 = vmax.f32 %v1283_v24, 0.0  ;;  %v1552_v5 = vmax.f32 %v1319_v41, 0.0 }
 0x230   : > { %v1781_v63 = vmax.f32 %v1537_v37, %v1651_v6  ;;  %v1288_v54 = vpop.f32.mrf.mxu0  ;;  %v1324_v23 = vpop.f32.mrf.mxu1  ;;  %v1823_v3 = vmax.f32 %v1549_v45, %v1663_v29  ;;  %v1777_v7 = vrot.slane %v1776_v42, 2  ;;  %v1771_v28 = vmax.f32 %v1769_v62, %v1770_v33 }
 0x231   : > { %v1652_v22 = vsel %vm1632_vm0, %v1540_v0, 0.0  ;;  %v1664_v50 = vsel %vm1632_vm0, %v1552_v5, 0.0  ;;  %v1287_v52 = vadd.f32 %v1286_v46, %v3939_v56  ;;  %v1323_v55 = vadd.f32 %v1322_v57, %v3939_v56 }
 0x232   : > { %v1782_v9 = vrot.slane %v1781_v63, 4  ;;  %v1788_v11 = vmax.f32 %v1538_v35, %v1652_v22  ;;  %v1292_v12 = vpop.f32.mrf.mxu0  ;;  %v1328_v44 = vpop.f32.mrf.mxu1  ;;  %v1824_v18 = vrot.slane %v1823_v3, 4  ;;  %v1830_v48 = vmax.f32 %v1550_v17, %v1664_v50 }
 0x233   : > { %v1778_v14 = vmax.f32 %v1776_v42, %v1777_v7  ;;  %v1759_v16 = vmax.f32 %v1757_v34, %v1758_v27  ;;  %v1766_v43 = vmax.f32 %v1764_v25, %v1765_v15  ;;  %v1772_v20 = vrot.slane %v1771_v28, 1 }
 0x234   : > { %v1783_v31 = vmax.f32 %v1781_v63, %v1782_v9  ;;  %v1789_v2 = vrot.slane %v1788_v11, 4  ;;  %v1294_v32 = vpop.f32.mrf.mxu0  ;;  %v1330_v36 = vpop.f32.mrf.mxu1  ;;  %v1825_v39 = vmax.f32 %v1823_v3, %v1824_v18  ;;  %v1831_v62 = vrot.slane %v1830_v48, 4 }
 0x235   : > { %v1293_v10 = vadd.f32 %v1292_v12, %v3939_v56  ;;  %v1541_v8 = vmax.f32 %v1287_v52, 0.0  ;;  %v1289_v37 = vadd.f32 %v1288_v54, %v3941_v19  ;;  %v1329_v40 = vadd.f32 %v1328_v44, %v3939_v56 }
 0x236   : > { %v1790_v53 = vmax.f32 %v1788_v11, %v1789_v2  ;;  %v3986_v51 = vpop.f32.mrf.mxu1  ;;  %v1784_v60 = vrot.slane %v1783_v31, 2  ;;  %v1826_v13 = vrot.slane %v1825_v39, 2  ;;  %v1298_v21 = vpop.f32.mrf.mxu0  ;;  %v1779_v61 = vrot.slane %v1778_v14, 1 }
 0x237   : > { %v1553_v34 = vmax.f32 %v1323_v55, 0.0  ;;  %v1543_v49 = vmax.f32 %v1293_v10, 0.0  ;;  %v1295_v24 = vadd.f32 %v1294_v32, %v3941_v19  ;;  %v1325_v45 = vadd.f32 %v1324_v23, %v3941_v19 }
 0x238   : > { %v3989_v58 = vpop.f32.mrf.mxu1  ;;  %v1791_v4 = vrot.slane %v1790_v53, 2  ;;  %v1785_v42 = vmax.f32 %v1783_v31, %v1784_v60  ;;  %v1555_v47 = vmax.f32 %v1329_v40, 0.0  ;;  %v1331_v46 = vadd.f32 %v1330_v36, %v3941_v19  ;;  %v1300_v41 = vpop.f32.mrf.mxu0 }
 0x239   : > { %v1827_v57 = vmax.f32 %v1825_v39, %v1826_v13  ;;  %v1832_v6 = vmax.f32 %v1830_v48, %v1831_v62  ;;  %v1655_v29 = vsel %vm1632_vm0, %v1543_v49, 0.0  ;;  %v1544_v0 = vmax.f32 %v1295_v24, 0.0 }
 0x23a   : > { %v1340_v25 = vpop.f32.mrf.mxu1  ;;  %v1792_v33 = vmax.f32 %v1790_v53, %v1791_v4  ;;  %v1542_v35 = vmax.f32 %v1289_v37, 0.0  ;;  %v1795_v63 = vmax.f32 %v1541_v8, %v1655_v29  ;;  %v1667_v54 = vsel %vm1632_vm0, %v1555_v47, 0.0  ;;  %v1304_v18 = vpop.f32.mrf.mxu0 }
 0x23b   : > { %v1773_v26 = vmax.f32 %v1771_v28, %v1772_v20  ;;  %v1780_v3 = vmax.f32 %v1778_v14, %v1779_v61  ;;  %v1837_v23 = vmax.f32 %v1553_v34, %v1667_v54  ;;  %v1656_v22 = vsel %vm1632_vm0, %v1544_v0, 0.0 }
 0x23c   : > { %v1342_v1 = vpop.f32.mrf.mxu1  ;;  %v1554_v27 = vmax.f32 %v1325_v45, 0.0  ;;  %v1796_v7 = vrot.slane %v1795_v63, 4  ;;  %v1802_v9 = vmax.f32 %v1542_v35, %v1656_v22  ;;  %v1556_v11 = vmax.f32 %v1331_v46, 0.0  ;;  %v1306_v4 = vpop.f32.mrf.mxu0 }
 0x23d   : > { %v1786_v12 = vrot.slane %v1785_v42, 1  ;;  %v1828_v44 = vrot.slane %v1827_v57, 1  ;;  %v1833_v15 = vrot.slane %v1832_v6, 2  ;;  %v1838_v17 = vrot.slane %v1837_v23, 4 }
 0x23e   : > { %v4002_v5 = vpop.f32.mrf.mxu1  ;;  %v1793_v31 = vrot.slane %v1792_v33, 1  ;;  %v1797_v28 = vmax.f32 %v1795_v63, %v1796_v7  ;;  %v1803_v2 = vrot.slane %v1802_v9, 4  ;;  %v1668_v32 = vsel %vm1632_vm0, %v1556_v11, 0.0 }
 0x23f   : > { %v2124_v36 = vsel %vm2123_vm1, %v1759_v16, %v1745_v30  ;;  %v1839_v39 = vmax.f32 %v1837_v23, %v1838_v17  ;;  %v1844_v48 = vmax.f32 %v1554_v27, %v1668_v32  ;;  %v1299_v52 = vadd.f32 %v1298_v21, %v3939_v56 }
 0x240   : > { %v4004_v50 = vpop.f32.mrf.mxu1  ;;  %v2137_v53 = vsel %vm2123_vm1, %v1766_v43, %v1752_v59  ;;  %v2126_v55 = vsel %vm2125_vm2, %v1773_v26, %v2124_v36  ;;  %v1798_v60 = vrot.slane %v1797_v28, 2  ;;  %v1834_v13 = vmax.f32 %v1832_v6, %v1833_v15 }
 0x241   : > { %v2138_v20 = vsel %vm2125_vm2, %v1780_v3, %v2137_v53  ;;  %v1804_v62 = vmax.f32 %v1802_v9, %v1803_v2  ;;  %v1305_v10 = vadd.f32 %v1304_v18, %v3939_v56  ;;  %v1787_v16 = vmax.f32 %v1785_v42, %v1786_v12 }
 0x242   : > { %v4010_v14 = vpop.f32.mrf.mxu1  ;;  %v4016_v8 = vmax.f32 %v1827_v57, %v1828_v44  ;;  %v1794_v21 = vmax.f32 %v1792_v33, %v1793_v31  ;;  %v1341_v37 = vadd.f32 %v1340_v25, %v3939_v56  ;;  %v1840_v40 = vrot.slane %v1839_v39, 2 }
 0x243   : > { %v1845_v59 = vrot.slane %v1844_v48, 4  ;;  %v1545_v43 = vmax.f32 %v1299_v52, 0.0  ;;  %v1547_v61 = vmax.f32 %v1305_v10, 0.0  ;;  %v1799_v49 = vmax.f32 %v1797_v28, %v1798_v60 }
 0x244   : > { %v1354_v30 = vpop.f32.mrf.mxu1  ;;  %v1301_v24 = vadd.f32 %v1300_v41, %v3941_v19  ;;  %v1307_v45 = vadd.f32 %v1306_v4, %v3941_v19  ;;  %v1343_v47 = vadd.f32 %v1342_v1, %v3941_v19  ;;  %v1835_v46 = vrot.slane %v1834_v13, 1 }
 0x245   : > { %v1805_v42 = vrot.slane %v1804_v62, 2  ;;  %v1335_v57 = vadd.f32 %v3986_v51, %v3939_v56  ;;  %v1659_v25 = vsel %vm1632_vm0, %v1547_v61, 0.0  ;;  %v2128_v29 = vsel %vm2127_vm3, %v1787_v16, %v2126_v55 }
 0x246   : > { %v4019_v34 = vpop.f32.mrf.mxu1  ;;  %v1337_v0 = vadd.f32 %v3989_v58, %v3941_v19  ;;  %v1809_v41 = vmax.f32 %v1545_v43, %v1659_v25  ;;  %v1559_v33 = vmax.f32 %v1341_v37, 0.0  ;;  %v1841_v35 = vmax.f32 %v1839_v39, %v1840_v40 }
 0x247   : > { %v1846_v1 = vmax.f32 %v1844_v48, %v1845_v59  ;;  %v1548_v63 = vmax.f32 %v1307_v45, 0.0  ;;  %v1560_v54 = vmax.f32 %v1343_v47, 0.0  ;;  %v4034_v3 = vsel %vm2127_vm3, %v1794_v21, %v2138_v20 }
 0x248   : > { %v4028_v6 = vpop.f32.mrf.mxu1  ;;  %v1800_v51 = vrot.slane %v1799_v49, 1  ;;  %v1546_v23 = vmax.f32 %v1301_v24, 0.0  ;;  %v1810_v22 = vrot.slane %v1809_v41, 4  ;;  %v4036_v27 = vmax.f32 %v1834_v13, %v1835_v46 }
 0x249   : > { %v1806_v7 = vmax.f32 %v1804_v62, %v1805_v42  ;;  %v1557_v9 = vmax.f32 %v1335_v57, 0.0  ;;  %v1660_v58 = vsel %vm1632_vm0, %v1548_v63, 0.0  ;;  %v1671_v44 = vsel %vm1632_vm0, %v1559_v33, 0.0 }
 0x24a   : > { %v1364_v26 = vpop.f32.mrf.mxu1  ;;  %v1811_v12 = vmax.f32 %v1809_v41, %v1810_v22  ;;  %v1816_v15 = vmax.f32 %v1546_v23, %v1660_v58  ;;  %v1672_v17 = vsel %vm1632_vm0, %v1560_v54, 0.0  ;;  %v1842_v18 = vrot.slane %v1841_v35, 1 }
 0x24b   : > { %v1847_v31 = vrot.slane %v1846_v1, 2  ;;  %v1558_v28 = vmax.f32 %v1337_v0, 0.0  ;;  %v1347_v2 = vadd.f32 %v4002_v5, %v3939_v56  ;;  %v1801_v36 = vmax.f32 %v1799_v49, %v1800_v51 }
 0x24c   : > { %v1366_v11 = vpop.f32.mrf.mxu1  ;;  %v1812_v39 = vrot.slane %v1811_v12, 2  ;;  %v1817_v48 = vrot.slane %v1816_v15, 4  ;;  %v1353_v52 = vadd.f32 %v4010_v14, %v3939_v56  ;;  %v1807_v53 = vrot.slane %v1806_v7, 1 }
 0x24d   : > { %v1851_v55 = vmax.f32 %v1557_v9, %v1671_v44  ;;  %v1858_v60 = vmax.f32 %v1558_v28, %v1672_v17  ;;  %v1355_v20 = vadd.f32 %v1354_v30, %v3941_v19  ;;  %v1349_v5 = vadd.f32 %v4004_v50, %v3941_v19 }
 0x24e   : > { %v4046_v32 = vpop.f32.mrf.mxu1  ;;  %v1813_v62 = vmax.f32 %v1811_v12, %v1812_v39  ;;  %v1818_v10 = vmax.f32 %v1816_v15, %v1817_v48  ;;  %v1563_v4 = vmax.f32 %v1353_v52, 0.0  ;;  %v1843_v16 = vmax.f32 %v1841_v35, %v1842_v18 }
 0x24f   : > { %v1848_v21 = vmax.f32 %v1846_v1, %v1847_v31  ;;  %v1561_v37 = vmax.f32 %v1347_v2, 0.0  ;;  %v1564_v40 = vmax.f32 %v1355_v20, 0.0  ;;  %v2130_v14 = vsel %vm2129_vm4, %v1801_v36, %v2128_v29 }
 0x250   : > { %v4051_v13 = vpop.f32.mrf.mxu1  ;;  %v1814_v43 = vrot.slane %v1813_v62, 1  ;;  %v1819_v61 = vrot.slane %v1818_v10, 2  ;;  %v1675_v30 = vsel %vm1632_vm0, %v1563_v4, 0.0  ;;  %v1808_v49 = vmax.f32 %v1806_v7, %v1807_v53 }
 0x251   : > { %v1852_v24 = vrot.slane %v1851_v55, 4  ;;  %v1865_v45 = vmax.f32 %v1561_v37, %v1675_v30  ;;  %v1676_v50 = vsel %vm1632_vm0, %v1564_v40, 0.0  ;;  %v1859_v57 = vrot.slane %v1858_v60, 4 }
 0x252   : > { %v1376_v59 = vpop.f32.mrf.mxu1  ;;  %v1815_v46 = vmax.f32 %v1813_v62, %v1814_v43  ;;  %v1820_v42 = vmax.f32 %v1818_v10, %v1819_v61  ;;  %v1562_v25 = vmax.f32 %v1349_v5, 0.0  ;;  %v1849_v0 = vrot.slane %v1848_v21, 1 }
 0x253   : > { %v1359_v29 = vadd.f32 %v4019_v34, %v3939_v56  ;;  %v1365_v41 = vadd.f32 %v1364_v26, %v3939_v56  ;;  %v1367_v33 = vadd.f32 %v1366_v11, %v3941_v19  ;;  %v1866_v54 = vrot.slane %v1865_v45, 4 }
 0x254   : > { %v1378_v47 = vpop.f32.mrf.mxu1  ;;  %v2132_v1 = vsel %vm2131_vm5, %v1815_v46, %v2130_v14  ;;  %v1821_v63 = vrot.slane %v1820_v42, 1  ;;  %v1872_v51 = vmax.f32 %v1562_v25, %v1676_v50  ;;  %v2140_v23 = vsel %vm2129_vm4, %v1808_v49, %v4034_v3 }
 0x255   : > { %v2134_v22 = vsel %vm2133_vm6, %v4016_v8, %v2132_v1  ;;  %v1853_v7 = vmax.f32 %v1851_v55, %v1852_v24  ;;  %v1567_v9 = vmax.f32 %v1365_v41, 0.0  ;;  %v1860_v11 = vmax.f32 %v1858_v60, %v1859_v57 }
 0x256   : > { %v1382_v35 = vpop.f32.mrf.mxu1  ;;  %v2136_v26 = vsel %vm2135_vm7, %v1843_v16, %v2134_v22  ;;  %v1822_v58 = vmax.f32 %v1820_v42, %v1821_v63  ;;  %v1568_v12 = vmax.f32 %v1367_v33, 0.0  ;;  %v1565_v15 = vmax.f32 %v1359_v29, 0.0 }
 0x257   : > { %v2178_v44 = vmax.f32 %v2136_v26, 0.0  ;;  %v1361_v17 = vadd.f32 %v4028_v6, %v3941_v19  ;;  %v1679_v3 = vsel %vm1632_vm0, %v1567_v9, 0.0  ;;  %v1850_v31 = vmax.f32 %v1848_v21, %v1849_v0 }
 0x258   : > { %v1384_v34 = vpop.f32.mrf.mxu1  ;;  %v2141_v8 = vsel %vm2131_vm5, %v1822_v58, %v2140_v23  ;;  %v1867_v28 = vmax.f32 %v1865_v45, %v1866_v54  ;;  %v1873_v2 = vrot.slane %v1872_v51, 4  ;;  %v1879_v39 = vmax.f32 %v1565_v15, %v1679_v3 }
 0x259   : > { %2184 = vst [vmem:[%s4078_s12] sm:$0xff] %v2178_v44  ;;  %v2142_v36 = vsel %vm2133_vm6, %v4036_v27, %v2141_v8  ;;  %v1854_v48 = vrot.slane %v1853_v7, 2  ;;  %v1680_v53 = vsel %vm1632_vm0, %v1568_v12, 0.0  ;;  %v1861_v60 = vrot.slane %v1860_v11, 2 }
 0x25a   : > { %v1388_v18 = vpop.f32.mrf.mxu1  ;;  %v2143_v52 = vsel %vm2135_vm7, %v1850_v31, %v2142_v36  ;;  %v1566_v20 = vmax.f32 %v1361_v17, 0.0  ;;  %v1377_v62 = vadd.f32 %v1376_v59, %v3939_v56  ;;  %v1868_v5 = vrot.slane %v1867_v28, 2 }
 0x25b   : > { %v2179_v55 = vmax.f32 %v2143_v52, 0.0  ;;  %v1874_v4 = vmax.f32 %v1872_v51, %v1873_v2  ;;  %v1379_v16 = vadd.f32 %v1378_v47, %v3941_v19  ;;  %v1880_v27 = vrot.slane %v1879_v39, 4 }
 0x25c   : > { %v1390_v6 = vpop.f32.mrf.mxu1  ;;  %v1886_v21 = vmax.f32 %v1566_v20, %v1680_v53  ;;  %v1371_v37 = vadd.f32 %v4046_v32, %v3939_v56  ;;  %v1571_v40 = vmax.f32 %v1377_v62, 0.0  ;;  %v1855_v43 = vmax.f32 %v1853_v7, %v1854_v48 }
 0x25d   : > { %2185 = vst [vmem:[%s4078_s12 + $0x8] sm:$0xff] %v2179_v55  ;;  %v1862_v61 = vmax.f32 %v1860_v11, %v1861_v60  ;;  %v1572_v30 = vmax.f32 %v1379_v16, 0.0  ;;  %v1869_v24 = vmax.f32 %v1867_v28, %v1868_v5  ;;  %v1875_v45 = vrot.slane %v1874_v4, 2 }
 0x25e   : > { %v1394_v10 = vpop.f32.mrf.mxu1  ;;  %v1373_v59 = vadd.f32 %v4051_v13, %v3941_v19  ;;  %v1683_v50 = vsel %vm1632_vm0, %v1571_v40, 0.0  ;;  %v1881_v47 = vmax.f32 %v1879_v39, %v1880_v27  ;;  %v1887_v46 = vrot.slane %v1886_v21, 4 }
 0x25f   : > { %v1569_v42 = vmax.f32 %v1371_v37, 0.0  ;;  %v1389_v57 = vadd.f32 %v1388_v18, %v3939_v56  ;;  %v1856_v25 = vrot.slane %v1855_v43, 1  ;;  %v1383_v0 = vadd.f32 %v1382_v35, %v3939_v56 }
 0x260   : > { %v1396_v14 = vpop.f32.mrf.mxu1  ;;  %v1391_v29 = vadd.f32 %v1390_v6, %v3941_v19  ;;  %v1684_v33 = vsel %vm1632_vm0, %v1572_v30, 0.0  ;;  %v1385_v13 = vadd.f32 %v1384_v34, %v3941_v19  ;;  %v1863_v54 = vrot.slane %v1862_v61, 1 }
 0x261   : > { %v1893_v41 = vmax.f32 %v1569_v42, %v1683_v50  ;;  %v1575_v1 = vmax.f32 %v1389_v57, 0.0  ;;  %v1876_v51 = vmax.f32 %v1874_v4, %v1875_v45  ;;  %v1570_v23 = vmax.f32 %v1373_v59, 0.0 }
 0x262   : > { %v1400_v49 = vpop.f32.mrf.mxu1  ;;  %v1576_v22 = vmax.f32 %v1391_v29, 0.0  ;;  %v1870_v7 = vrot.slane %v1869_v24, 1  ;;  %v1882_v9 = vrot.slane %v1881_v47, 2  ;;  %v1888_v26 = vmax.f32 %v1886_v21, %v1887_v46 }
 0x263   : > { %v1687_v35 = vsel %vm1632_vm0, %v1575_v1, 0.0  ;;  %v1900_v11 = vmax.f32 %v1570_v23, %v1684_v33  ;;  %v1573_v12 = vmax.f32 %v1383_v0, 0.0  ;;  %v1395_v34 = vadd.f32 %v1394_v10, %v3939_v56 }
 0x264   : > { %v1402_v32 = vpop.f32.mrf.mxu1  ;;  %v1688_v44 = vsel %vm1632_vm0, %v1576_v22, 0.0  ;;  %v1894_v15 = vrot.slane %v1893_v41, 4  ;;  %v1574_v17 = vmax.f32 %v1385_v13, 0.0  ;;  %v1397_v3 = vadd.f32 %v1396_v14, %v3941_v19 }
 0x265   : > { %v1401_v18 = vadd.f32 %v1400_v49, %v3939_v56  ;;  %v1857_v8 = vmax.f32 %v1855_v43, %v1856_v25  ;;  %v4108_v28 = vmax.f32 %v1862_v61, %v1863_v54  ;;  %v1907_v2 = vmax.f32 %v1573_v12, %v1687_v35 }
 0x266   : > { %v1406_v63 = vpop.f32.mrf.mxu1  ;;  %v1403_v36 = vadd.f32 %v1402_v32, %v3941_v19  ;;  %v1871_v39 = vmax.f32 %v1869_v24, %v1870_v7  ;;  %v1877_v6 = vrot.slane %v1876_v51, 1  ;;  %v1914_v48 = vmax.f32 %v1574_v17, %v1688_v44 }
 0x267   : > { %v1579_v52 = vmax.f32 %v1401_v18, 0.0  ;;  %v1883_v55 = vmax.f32 %v1881_v47, %v1882_v9  ;;  %v1889_v60 = vrot.slane %v1888_v26, 2  ;;  %v1577_v20 = vmax.f32 %v1395_v34, 0.0 }
 0x268   : > { %v1408_v58 = vpop.f32.mrf.mxu1  ;;  %v1580_v62 = vmax.f32 %v1403_v36, 0.0  ;;  %v1895_v10 = vmax.f32 %v1893_v41, %v1894_v15  ;;  %v1901_v5 = vrot.slane %v1900_v11, 4  ;;  %v1578_v4 = vmax.f32 %v1397_v3, 0.0 }
 0x269   : > { %v1691_v16 = vsel %vm1632_vm0, %v1579_v52, 0.0  ;;  %v1908_v21 = vrot.slane %v1907_v2, 4  ;;  %v1407_v14 = vadd.f32 %v1406_v63, %v3939_v56  ;;  %v1915_v43 = vrot.slane %v1914_v48, 4 }
 0x26a   : > { %v1412_v31 = vpop.f32.mrf.mxu1  ;;  %v1921_v37 = vmax.f32 %v1577_v20, %v1691_v16  ;;  %v1692_v40 = vsel %vm1632_vm0, %v1580_v62, 0.0  ;;  %v1409_v30 = vadd.f32 %v1408_v58, %v3941_v19  ;;  %v1878_v45 = vmax.f32 %v1876_v51, %v1877_v6 }
 0x26b   : > { %v1928_v61 = vmax.f32 %v1578_v4, %v1692_v40  ;;  %v1413_v49 = vadd.f32 %v1412_v31, %v3939_v56  ;;  %v4118_v59 = vmax.f32 %v1888_v26, %v1889_v60  ;;  %v1896_v46 = vrot.slane %v1895_v10, 2 }
 0x26c   : > { %v1414_v53 = vpop.f32.mrf.mxu1  ;;  %v1922_v50 = vrot.slane %v1921_v37, 4  ;;  %v1902_v42 = vmax.f32 %v1900_v11, %v1901_v5  ;;  %v1884_v0 = vrot.slane %v1883_v55, 1  ;;  %v1909_v29 = vmax.f32 %v1907_v2, %v1908_v21 }
 0x26d   : > { %v1415_v47 = vadd.f32 %v1414_v53, %v3941_v19  ;;  %v1929_v57 = vrot.slane %v1928_v61, 4  ;;  %v1583_v32 = vmax.f32 %v1413_v49, 0.0  ;;  %v1581_v41 = vmax.f32 %v1407_v14, 0.0 }
 0x26e   : > { %v1418_v27 = vpop.f32.mrf.mxu1  ;;  %v2144_v13 = vsel %vm2123_vm1, %v1871_v39, %v1857_v8  ;;  %v1916_v1 = vmax.f32 %v1914_v48, %v1915_v43  ;;  %v1582_v63 = vmax.f32 %v1409_v30, 0.0  ;;  %v1923_v23 = vmax.f32 %v1921_v37, %v1922_v50 }
 0x26f   : > { %v1584_v33 = vmax.f32 %v1415_v47, 0.0  ;;  %v1695_v54 = vsel %vm1632_vm0, %v1583_v32, 0.0  ;;  %v1930_v22 = vmax.f32 %v1928_v61, %v1929_v57  ;;  %v1891_v26 = vrot.slane %v4118_v59, 1 }
 0x270   : > { %v1420_v24 = vpop.f32.mrf.mxu1  ;;  %v1935_v7 = vmax.f32 %v1581_v41, %v1695_v54  ;;  %v1897_v35 = vmax.f32 %v1895_v10, %v1896_v46  ;;  %v1903_v58 = vrot.slane %v1902_v42, 2  ;;  %v1885_v44 = vmax.f32 %v1883_v55, %v1884_v0 }
 0x271   : > { %v1696_v9 = vsel %vm1632_vm0, %v1584_v33, 0.0  ;;  %v1910_v34 = vrot.slane %v1909_v29, 2  ;;  %v1419_v17 = vadd.f32 %v1418_v27, %v3939_v56  ;;  %v1917_v3 = vrot.slane %v1916_v1, 2 }
 0x272   : > { %v1424_v25 = vpop.f32.mrf.mxu1  ;;  %v1942_v11 = vmax.f32 %v1582_v63, %v1696_v9  ;;  %v1936_v15 = vrot.slane %v1935_v7, 4  ;;  %v1421_v31 = vadd.f32 %v1420_v24, %v3941_v19  ;;  %v1924_v36 = vrot.slane %v1923_v23, 2 }
 0x273   : > { %v1425_v8 = vadd.f32 %v1424_v25, %v3939_v56  ;;  %v1931_v39 = vrot.slane %v1930_v22, 2  ;;  %v1898_v52 = vrot.slane %v1897_v35, 1  ;;  %v1904_v53 = vmax.f32 %v1902_v42, %v1903_v58 }
 0x274   : > { %v1426_v51 = vpop.f32.mrf.mxu1  ;;  %v1943_v18 = vrot.slane %v1942_v11, 4  ;;  %v1937_v6 = vmax.f32 %v1935_v7, %v1936_v15  ;;  %v1911_v62 = vmax.f32 %v1909_v29, %v1910_v34  ;;  %v1585_v5 = vmax.f32 %v1419_v17, 0.0 }
 0x275   : > { %v1427_v48 = vadd.f32 %v1426_v51, %v3941_v19  ;;  %v1587_v60 = vmax.f32 %v1425_v8, 0.0  ;;  %v1918_v16 = vmax.f32 %v1916_v1, %v1917_v3  ;;  %v1586_v21 = vmax.f32 %v1421_v31, 0.0 }
 0x276   : > { %v1430_v12 = vpop.f32.mrf.mxu1  ;;  %v1944_v55 = vmax.f32 %v1942_v11, %v1943_v18  ;;  %v1938_v10 = vrot.slane %v1937_v6, 2  ;;  %v1925_v14 = vmax.f32 %v1923_v23, %v1924_v36  ;;  %v1932_v43 = vmax.f32 %v1930_v22, %v1931_v39 }
 0x277   : > { %v1588_v4 = vmax.f32 %v1427_v48, 0.0  ;;  %v1699_v37 = vsel %vm1632_vm0, %v1587_v60, 0.0  ;;  %v2151_v49 = vsel %vm2123_vm1, %v1878_v45, %v4108_v28  ;;  %v2145_v42 = vsel %vm2125_vm2, %v1885_v44, %v2144_v13 }
 0x278   : > { %v4130_v2 = vpop.f32.mrf.mxu1  ;;  %v1945_v27 = vrot.slane %v1944_v55, 2  ;;  %v1949_v61 = vmax.f32 %v1585_v5, %v1699_v37  ;;  %v1939_v24 = vmax.f32 %v1937_v6, %v1938_v10  ;;  %v1892_v57 = vmax.f32 %v4118_v59, %v1891_v26 }
 0x279   : > { %v1700_v30 = vsel %vm1632_vm0, %v1588_v4, 0.0  ;;  %v1899_v0 = vmax.f32 %v1897_v35, %v1898_v52  ;;  %v1905_v29 = vrot.slane %v1904_v53, 1  ;;  %v1912_v41 = vrot.slane %v1911_v62, 1 }
 0x27a   : > { %v1436_v20 = vpop.f32.mrf.mxu1  ;;  %v1956_v50 = vmax.f32 %v1586_v21, %v1700_v30  ;;  %v1946_v32 = vmax.f32 %v1944_v55, %v1945_v27  ;;  %v1950_v25 = vrot.slane %v1949_v61, 4  ;;  %v1919_v63 = vrot.slane %v1918_v16, 1 }
 0x27b   : > { %v1437_v47 = vadd.f32 %v1436_v20, %v3939_v56  ;;  %v1926_v28 = vrot.slane %v1925_v14, 1  ;;  %v1933_v45 = vrot.slane %v1932_v43, 1  ;;  %v1940_v51 = vrot.slane %v1939_v24, 1 }
 0x27c   : > { %v1438_v40 = vpop.f32.mrf.mxu1  ;;  %v1957_v33 = vrot.slane %v1956_v50, 4  ;;  %v1951_v54 = vmax.f32 %v1949_v61, %v1950_v25  ;;  %v2152_v59 = vsel %vm2125_vm2, %v1892_v57, %v2151_v49  ;;  %v1947_v9 = vrot.slane %v1946_v32, 1 }
 0x27d   : > { %v1591_v22 = vmax.f32 %v1437_v47, 0.0  ;;  %v1439_v7 = vadd.f32 %v1438_v40, %v3941_v19  ;;  %v1431_v35 = vadd.f32 %v1430_v12, %v3939_v56  ;;  %v2146_v58 = vsel %vm2127_vm3, %v1899_v0, %v2145_v42 }
 0x27e   : > { %v4140_v46 = vpop.f32.mrf.mxu1  ;;  %v1958_v23 = vmax.f32 %v1956_v50, %v1957_v33  ;;  %v1952_v26 = vrot.slane %v1951_v54, 2  ;;  %v1906_v11 = vmax.f32 %v1904_v53, %v1905_v29  ;;  %v1913_v44 = vmax.f32 %v1911_v62, %v1912_v41 }
 0x27f   : > { %v1920_v17 = vmax.f32 %v1918_v16, %v1919_v63  ;;  %v1927_v3 = vmax.f32 %v1925_v14, %v1926_v28  ;;  %v1934_v18 = vmax.f32 %v1932_v43, %v1933_v45  ;;  %v1941_v8 = vmax.f32 %v1939_v24, %v1940_v51 }
 0x280   : > { %v4144_v1 = vpop.f32.mrf.mxu1  ;;  %v1959_v34 = vrot.slane %v1958_v23, 2  ;;  %v1953_v31 = vmax.f32 %v1951_v54, %v1952_v26  ;;  %v1703_v39 = vsel %vm1632_vm0, %v1591_v22, 0.0  ;;  %v1592_v6 = vmax.f32 %v1439_v7, 0.0 }
 0x281   : > { %v1948_v52 = vmax.f32 %v1946_v32, %v1947_v9  ;;  %v1589_v12 = vmax.f32 %v1431_v35, 0.0  ;;  %v1433_v53 = vadd.f32 %v4130_v2, %v3941_v19  ;;  %v2153_v60 = vsel %vm2127_vm3, %v1906_v11, %v2152_v59 }
 0x282   : > { %v1448_v13 = vpop.f32.mrf.mxu1  ;;  %v1960_v36 = vmax.f32 %v1958_v23, %v1959_v34  ;;  %v1954_v55 = vrot.slane %v1953_v31, 1  ;;  %v2147_v20 = vsel %vm2129_vm4, %v1913_v44, %v2146_v58  ;;  %v2154_v5 = vsel %vm2129_vm4, %v1920_v17, %v2153_v60 }
 0x283   : > { %v2148_v4 = vsel %vm2131_vm5, %v1927_v3, %v2147_v20  ;;  %v1963_v27 = vmax.f32 %v1589_v12, %v1703_v39  ;;  %v2155_v21 = vsel %vm2131_vm5, %v1934_v18, %v2154_v5  ;;  %v1704_v2 = vsel %vm1632_vm0, %v1592_v6, 0.0 }
 0x284   : > { %v1450_v15 = vpop.f32.mrf.mxu1  ;;  %v1961_v62 = vrot.slane %v1960_v36, 1  ;;  %v1955_v16 = vmax.f32 %v1953_v31, %v1954_v55  ;;  %v2149_v37 = vsel %vm2133_vm6, %v1941_v8, %v2148_v4  ;;  %v2156_v43 = vsel %vm2133_vm6, %v1948_v52, %v2155_v21 }
 0x285   : > { %v1590_v30 = vmax.f32 %v1433_v53, 0.0  ;;  %v1449_v50 = vadd.f32 %v1448_v13, %v3939_v56  ;;  %v1964_v57 = vrot.slane %v1963_v27, 4  ;;  %v1451_v25 = vadd.f32 %v1450_v15, %v3941_v19 }
 0x286   : > { %v1454_v48 = vpop.f32.mrf.mxu1  ;;  %v1962_v40 = vmax.f32 %v1960_v36, %v1961_v62  ;;  %v2150_v61 = vsel %vm2135_vm7, %v1955_v16, %v2149_v37  ;;  %v1443_v28 = vadd.f32 %v4140_v46, %v3939_v56  ;;  %v1445_v51 = vadd.f32 %v4144_v1, %v3941_v19 }
 0x287   : > { %v2180_v49 = vmax.f32 %v2150_v61, 0.0  ;;  %v1970_v32 = vmax.f32 %v1590_v30, %v1704_v2  ;;  %v1595_v29 = vmax.f32 %v1449_v50, 0.0  ;;  %v1965_v33 = vmax.f32 %v1963_v27, %v1964_v57 }
 0x288   : > { %v1456_v10 = vpop.f32.mrf.mxu1  ;;  %v2157_v24 = vsel %vm2135_vm7, %v1962_v40, %v2156_v43  ;;  %v1596_v45 = vmax.f32 %v1451_v25, 0.0  ;;  %v1593_v59 = vmax.f32 %v1443_v28, 0.0  ;;  %v1594_v58 = vmax.f32 %v1445_v51, 0.0 }
 0x289   : > { %v2181_v42 = vmax.f32 %v2157_v24, 0.0  ;;  %2186 = vst [vmem:[%s4078_s12 + $0x10] sm:$0xff] %v2180_v49  ;;  %v1971_v63 = vrot.slane %v1970_v32, 4  ;;  %v1707_v23 = vsel %vm1632_vm0, %v1595_v29, 0.0  ;;  %v1966_v7 = vrot.slane %v1965_v33, 2 }
 0x28a   : > { %v1460_v14 = vpop.f32.mrf.mxu1  ;;  %v1708_v26 = vsel %vm1632_vm0, %v1596_v45, 0.0  ;;  %v1977_v46 = vmax.f32 %v1593_v59, %v1707_v23  ;;  %v1455_v3 = vadd.f32 %v1454_v48, %v3939_v56  ;;  %v1457_v36 = vadd.f32 %v1456_v10, %v3941_v19 }
 0x28b   : > { %2187 = vst [vmem:[%s4078_s12 + $0x18] sm:$0xff] %v2181_v42  ;;  %v1972_v13 = vmax.f32 %v1970_v32, %v1971_v63  ;;  %v1461_v9 = vadd.f32 %v1460_v14, %v3939_v56  ;;  %v1967_v34 = vmax.f32 %v1965_v33, %v1966_v7  ;;  %v1984_v15 = vmax.f32 %v1594_v58, %v1708_v26 }
 0x28c   : > { %v1462_v47 = vpop.f32.mrf.mxu1  ;;  %v1978_v8 = vrot.slane %v1977_v46, 4  ;;  %v1597_v62 = vmax.f32 %v1455_v3, 0.0  ;;  %v1598_v27 = vmax.f32 %v1457_v36, 0.0 }
 0x28d   : > { %v1463_v11 = vadd.f32 %v1462_v47, %v3941_v19  ;;  %v1973_v1 = vrot.slane %v1972_v13, 2  ;;  %v1599_v17 = vmax.f32 %v1461_v9, 0.0  ;;  %v1968_v12 = vrot.slane %v1967_v34, 1 }
 0x28e   : > { %v1466_v0 = vpop.f32.mrf.mxu1  ;;  %v1985_v60 = vrot.slane %v1984_v15, 4  ;;  %v1979_v16 = vmax.f32 %v1977_v46, %v1978_v8 }
 0x28f   : > { %v1600_v39 = vmax.f32 %v1463_v11, 0.0  ;;  %v1974_v53 = vmax.f32 %v1972_v13, %v1973_v1  ;;  %v1711_v20 = vsel %vm1632_vm0, %v1599_v17, 0.0  ;;  %v1467_v21 = vadd.f32 %v1466_v0, %v3939_v56 }
 0x290   : > { %v1468_v41 = vpop.f32.mrf.mxu1  ;;  %v1991_v37 = vmax.f32 %v1597_v62, %v1711_v20  ;;  %v4191_v61 = vmax.f32 %v1967_v34, %v1968_v12  ;;  %v1986_v49 = vmax.f32 %v1984_v15, %v1985_v60  ;;  %v1980_v25 = vrot.slane %v1979_v16, 2 }
 0x291   : > { %v1712_v10 = vsel %vm1632_vm0, %v1600_v39, 0.0  ;;  %v1469_v40 = vadd.f32 %v1468_v41, %v3941_v19  ;;  %v1975_v30 = vrot.slane %v1974_v53, 1  ;;  %v1601_v0 = vmax.f32 %v1467_v21, 0.0 }
 0x292   : > { %v1472_v54 = vpop.f32.mrf.mxu1  ;;  %v1998_v50 = vmax.f32 %v1598_v27, %v1712_v10  ;;  %v1992_v33 = vrot.slane %v1991_v37, 4  ;;  %v1987_v34 = vrot.slane %v1986_v49, 2  ;;  %v4211_v39 = vmax.f32 %v1979_v16, %v1980_v25 }
 0x293   : > { %v1473_v18 = vadd.f32 %v1472_v54, %v3939_v56  ;;  %v1602_v63 = vmax.f32 %v1469_v40, 0.0 }
 0x294   : > { %v1474_v22 = vpop.f32.mrf.mxu1  ;;  %v1999_v13 = vrot.slane %v1998_v50, 4  ;;  %v1993_v1 = vmax.f32 %v1991_v37, %v1992_v33 }
 0x295   : > { %v1475_v6 = vadd.f32 %v1474_v22, %v3941_v19  ;;  %v1603_v48 = vmax.f32 %v1473_v18, 0.0  ;;  %v4209_v18 = vmax.f32 %v1974_v53, %v1975_v30 }
 0x296   : > { %v1478_v35 = vpop.f32.mrf.mxu1  ;;  %v1994_v53 = vrot.slane %v1993_v1, 2 }
 0x297   : > { %v1604_v2 = vmax.f32 %v1475_v6, 0.0  ;;  %v1479_v24 = vadd.f32 %v1478_v35, %v3939_v56  ;;  %v1715_v47 = vsel %vm1632_vm0, %v1603_v48, 0.0  ;;  %v2000_v6 = vmax.f32 %v1998_v50, %v1999_v13 }
 0x298   : > { %v1480_v44 = vpop.f32.mrf.mxu1  ;;  %v2005_v51 = vmax.f32 %v1601_v0, %v1715_v47 }
 0x299   : > { %v1481_v29 = vadd.f32 %v1480_v44, %v3941_v19  ;;  %v1716_v28 = vsel %vm1632_vm0, %v1604_v2, 0.0  ;;  %v1605_v23 = vmax.f32 %v1479_v24, 0.0  ;;  %v1982_v2 = vrot.slane %v4211_v39, 1 }
 0x29a   : > { %v1484_v31 = vpop.f32.mrf.mxu1  ;;  %v2012_v58 = vmax.f32 %v1602_v63, %v1716_v28 }
 0x29b   : > { %v1485_v52 = vadd.f32 %v1484_v31, %v3939_v56  ;;  %v1606_v46 = vmax.f32 %v1481_v29, 0.0  ;;  %v2006_v31 = vrot.slane %v2005_v51, 4 }
 0x29c   : > { %v1486_v55 = vpop.f32.mrf.mxu1  ;;  %v2013_v60 = vrot.slane %v2012_v58, 4 }
 0x29d   : > { %v1487_v5 = vadd.f32 %v1486_v55, %v3941_v19  ;;  %v1607_v14 = vmax.f32 %v1485_v52, 0.0  ;;  %v2007_v10 = vmax.f32 %v2005_v51, %v2006_v31 }
 0x29e   : > { %v1490_v4 = vpop.f32.mrf.mxu1  ;;  %v2014_v50 = vmax.f32 %v2012_v58, %v2013_v60 }
 0x29f   : > { %v1608_v42 = vmax.f32 %v1487_v5, 0.0  ;;  %v1491_v57 = vadd.f32 %v1490_v4, %v3939_v56  ;;  %v1719_v45 = vsel %vm1632_vm0, %v1607_v14, 0.0  ;;  %v4217_v5 = vmax.f32 %v1986_v49, %v1987_v34 }
 0x2a0   : > { %v1492_v43 = vpop.f32.mrf.mxu1  ;;  %v2019_v11 = vmax.f32 %v1605_v23, %v1719_v45  ;;  %v2001_v14 = vrot.slane %v2000_v6, 2  ;;  %v2008_v33 = vrot.slane %v2007_v10, 2  ;;  %v2015_v13 = vrot.slane %v2014_v50, 2 }
 0x2a1   : > { %v1493_v22 = vadd.f32 %v1492_v43, %v3941_v19  ;;  %v1720_v59 = vsel %vm1632_vm0, %v1608_v42, 0.0  ;;  %v1609_v9 = vmax.f32 %v1491_v57, 0.0  ;;  %v1989_v57 = vrot.slane %v4217_v5, 1 }
 0x2a2   : > { %v1496_v32 = vpop.f32.mrf.mxu1  ;;  %v2026_v8 = vmax.f32 %v1606_v46, %v1720_v59  ;;  %v2020_v20 = vrot.slane %v2019_v11, 4 }
 0x2a3   : > { %v1497_v41 = vadd.f32 %v1496_v32, %v3939_v56  ;;  %v1610_v36 = vmax.f32 %v1493_v22, 0.0 }
 0x2a4   : > { %v1498_v54 = vpop.f32.mrf.mxu1  ;;  %v2027_v21 = vrot.slane %v2026_v8, 4  ;;  %v2021_v47 = vmax.f32 %v2019_v11, %v2020_v20 }
 0x2a5   : > { %v1611_v7 = vmax.f32 %v1497_v41, 0.0  ;;  %v1499_v26 = vadd.f32 %v1498_v54, %v3941_v19  ;;  %v1995_v41 = vmax.f32 %v1993_v1, %v1994_v53 }
 0x2a6   : > { %v1502_v35 = vpop.f32.mrf.mxu1  ;;  %v2028_v63 = vmax.f32 %v2026_v8, %v2027_v21  ;;  %v2022_v59 = vrot.slane %v2021_v47, 2  ;;  %v1983_v21 = vmax.f32 %v4211_v39, %v1982_v2 }
 0x2a7   : > { %v1723_v44 = vsel %vm1632_vm0, %v1611_v7, 0.0  ;;  %v1612_v17 = vmax.f32 %v1499_v26, 0.0  ;;  %v1503_v55 = vadd.f32 %v1502_v35, %v3939_v56  ;;  %v2002_v7 = vmax.f32 %v2000_v6, %v2001_v14 }
 0x2a8   : > { %v2033_v15 = vmax.f32 %v1609_v9, %v1723_v44  ;;  %v1504_v3 = vpop.f32.mrf.mxu1  ;;  %v2009_v44 = vmax.f32 %v2007_v10, %v2008_v33  ;;  %v2029_v34 = vrot.slane %v2028_v63, 2  ;;  %v2023_v6 = vmax.f32 %v2021_v47, %v2022_v59 }
 0x2a9   : > { %v1724_v52 = vsel %vm1632_vm0, %v1612_v17, 0.0  ;;  %v1505_v27 = vadd.f32 %v1504_v3, %v3941_v19  ;;  %v1613_v30 = vmax.f32 %v1503_v55, 0.0  ;;  %v1990_v47 = vmax.f32 %v4217_v5, %v1989_v57 }
 0x2aa   : > { %v1508_v12 = vpop.f32.mrf.mxu1  ;;  %v2040_v62 = vmax.f32 %v1610_v36, %v1724_v52  ;;  %v2034_v4 = vrot.slane %v2033_v15, 4  ;;  %v2016_v36 = vmax.f32 %v2014_v50, %v2015_v13  ;;  %v2158_v33 = vsel %vm2123_vm1, %v1983_v21, %v4191_v61 }
 0x2ab   : > { %v1509_v48 = vadd.f32 %v1508_v12, %v3939_v56  ;;  %v1614_v25 = vmax.f32 %v1505_v27, 0.0  ;;  %v2165_v5 = vsel %vm2123_vm1, %v1990_v47, %v4209_v18 }
 0x2ac   : > { %v1510_v16 = vpop.f32.mrf.mxu1  ;;  %v2041_v43 = vrot.slane %v2040_v62, 4  ;;  %v2035_v32 = vmax.f32 %v2033_v15, %v2034_v4  ;;  %v2010_v4 = vrot.slane %v2009_v44, 1 }
 0x2ad   : > { %v1615_v37 = vmax.f32 %v1509_v48, 0.0  ;;  %v1511_v40 = vadd.f32 %v1510_v16, %v3941_v19  ;;  %v2030_v48 = vmax.f32 %v2028_v63, %v2029_v34 }
 0x2ae   : > { %v1514_v24 = vpop.f32.mrf.mxu1  ;;  %v2042_v45 = vmax.f32 %v2040_v62, %v2041_v43  ;;  %v2036_v26 = vrot.slane %v2035_v32, 2  ;;  %v1996_v62 = vrot.slane %v1995_v41, 1  ;;  %v2017_v43 = vrot.slane %v2016_v36, 1 }
 0x2af   : > { %v1727_v49 = vsel %vm1632_vm0, %v1615_v37, 0.0  ;;  %v1616_v42 = vmax.f32 %v1511_v40, 0.0  ;;  %v1515_v23 = vadd.f32 %v1514_v24, %v3939_v56  ;;  %v2003_v37 = vrot.slane %v2002_v7, 1 }
 0x2b0   : > { %v2047_v0 = vmax.f32 %v1613_v30, %v1727_v49  ;;  %v1516_v29 = vpop.f32.mrf.mxu1  ;;  %v2043_v17 = vrot.slane %v2042_v45, 2  ;;  %v2037_v55 = vmax.f32 %v2035_v32, %v2036_v26  ;;  %v2024_v40 = vrot.slane %v2023_v6, 1 }
 0x2b1   : > { %v1728_v28 = vsel %vm1632_vm0, %v1616_v42, 0.0  ;;  %v1517_v46 = vadd.f32 %v1516_v29, %v3941_v19  ;;  %v1617_v8 = vmax.f32 %v1515_v23, 0.0  ;;  %v1997_v49 = vmax.f32 %v1995_v41, %v1996_v62 }
 0x2b2   : > { %v2048_v54 = vrot.slane %v2047_v0, 4  ;;  %v2054_v51 = vmax.f32 %v1614_v25, %v1728_v28  ;;  %v1520_v22 = vpop.f32.mrf.mxu1  ;;  %v2044_v27 = vmax.f32 %v2042_v45, %v2043_v17  ;;  %v2038_v30 = vrot.slane %v2037_v55, 1 }
 0x2b3   : > { %v1521_v9 = vadd.f32 %v1520_v22, %v3939_v56  ;;  %v1618_v60 = vmax.f32 %v1517_v46, 0.0  ;;  %v2031_v42 = vrot.slane %v2030_v48, 1  ;;  %v2011_v38 = vmax.f32 %v2009_v44, %v2010_v4 }
 0x2b4   : > { %v2049_v35 = vmax.f32 %v2047_v0, %v2048_v54  ;;  %v2055_v58 = vrot.slane %v2054_v51, 4  ;;  %v1522_v11 = vpop.f32.mrf.mxu1  ;;  %v2045_v25 = vrot.slane %v2044_v27, 1  ;;  %v2004_v39 = vmax.f32 %v2002_v7, %v2003_v37 }
 0x2b5   : > { %v1619_v1 = vmax.f32 %v1521_v9, 0.0  ;;  %v1523_v15 = vadd.f32 %v1522_v11, %v3941_v19  ;;  %v2025_v2 = vmax.f32 %v2023_v6, %v2024_v40  ;;  %v2018_v28 = vmax.f32 %v2016_v36, %v2017_v43 }
 0x2b6   : > { %v2050_v3 = vrot.slane %v2049_v35, 2  ;;  %v2056_v31 = vmax.f32 %v2054_v51, %v2055_v58  ;;  %v2039_v45 = vmax.f32 %v2037_v55, %v2038_v30  ;;  %v2159_v57 = vsel %vm2125_vm2, %v1997_v49, %v2158_v33 }
 0x2b7   : > { %v1731_v56 = vsel %vm1632_vm0, %v1619_v1, 0.0  ;;  %v1620_v52 = vmax.f32 %v1523_v15, 0.0  ;;  %v2032_v41 = vmax.f32 %v2030_v48, %v2031_v42  ;;  %v2160_v22 = vsel %vm2127_vm3, %v2011_v38, %v2159_v57 }
 0x2b8   : > { %v2057_v12 = vrot.slane %v2056_v31, 2  ;;  %v2061_v20 = vmax.f32 %v1617_v8, %v1731_v56  ;;  %v2051_v53 = vmax.f32 %v2049_v35, %v2050_v3  ;;  %v2046_v13 = vmax.f32 %v2044_v27, %v2045_v25 }
 0x2b9   : > { %v1732_v19 = vsel %vm1632_vm0, %v1620_v52, 0.0  ;;  %v2166_v59 = vsel %vm2125_vm2, %v2004_v39, %v2165_v5  ;;  %v2161_v9 = vsel %vm2129_vm4, %v2025_v2, %v2160_v22 }
 0x2ba   : > { %v2062_v16 = vrot.slane %v2061_v20, 4  ;;  %v2068_v10 = vmax.f32 %v1618_v60, %v1732_v19  ;;  %v2058_v14 = vmax.f32 %v2056_v31, %v2057_v12  ;;  %v2052_v32 = vrot.slane %v2051_v53, 1 }
 0x2bb   : > { %v2167_v35 = vsel %vm2127_vm3, %v2018_v28, %v2166_v59  ;;  %v2162_v18 = vsel %vm2131_vm5, %v2039_v45, %v2161_v9 }
 0x2bc   : > { %v2063_v24 = vmax.f32 %v2061_v20, %v2062_v16  ;;  %v2069_v50 = vrot.slane %v2068_v10, 4  ;;  %v2059_v63 = vrot.slane %v2058_v14, 1  ;;  %v2053_v23 = vmax.f32 %v2051_v53, %v2052_v32 }
 0x2bd   : > { %v2168_v11 = vsel %vm2129_vm4, %v2032_v41, %v2167_v35 }
 0x2be   : > { %v2064_v0 = vrot.slane %v2063_v24, 2  ;;  %v2070_v29 = vmax.f32 %v2068_v10, %v2069_v50  ;;  %v2060_v26 = vmax.f32 %v2058_v14, %v2059_v63  ;;  %v2163_v44 = vsel %vm2133_vm6, %v2053_v23, %v2162_v18 }
 0x2bf   : > { %v2169_v34 = vsel %vm2131_vm5, %v2046_v13, %v2168_v11 }
 0x2c0   : > { %v2065_v54 = vmax.f32 %v2063_v24, %v2064_v0  ;;  %v2071_v51 = vrot.slane %v2070_v29, 2  ;;  %v2170_v17 = vsel %vm2133_vm6, %v2060_v26, %v2169_v34 }
 0x2c2   : > { %v2066_v61 = vrot.slane %v2065_v54, 1  ;;  %v2072_v7 = vmax.f32 %v2070_v29, %v2071_v51 }
 0x2c4   : > { %v2067_v58 = vmax.f32 %v2065_v54, %v2066_v61  ;;  %v2073_v46 = vrot.slane %v2072_v7, 1 }
 0x2c6   : > { %v2164_v1 = vsel %vm2135_vm7, %v2067_v58, %v2163_v44  ;;  %v2074_v15 = vmax.f32 %v2072_v7, %v2073_v46 }
 0x2c7   : > { %v2182_v3 = vmax.f32 %v2164_v1, 0.0 }
 0x2c8   : > { %v2171_v31 = vsel %vm2135_vm7, %v2074_v15, %v2170_v17 }
 0x2c9   : > { %2188 = vst [vmem:[%s4078_s12 + $0x20] sm:$0xff] %v2182_v3  ;;  %v2183_v8 = vmax.f32 %v2171_v31, 0.0 }
 0x2cb   : > { %2189 = vst [vmem:[%s4078_s12 + $0x28] sm:$0xff] %v2183_v8 }
 0x2cc   : > { %3247 = shalt.err (!%p3244_p12)
}
 0x2cd   : > { %s3248_s23 = scalar_lea.hbm %s4258_s24, 768  ;;  %s3252_s7 = scalar_lea.hbm %s4316_s6, 1536 }
 0x2ce   : > { %p3249_p13 = scmp.ne.s32.totalorder %s4258_s24, %s3248_s23  ;;  %p3253_p10 = scmp.lt.s32.totalorder %s4258_s24, %s4316_s6 }
 0x2cf   : > { %p3254_p11 = scmp.lt.s32.totalorder %s3252_s7, %s3248_s23 }
 0x2d0   : > { %p3250_p0 = pnand %p3249_p13, %p3470_p3 }
 0x2d1   : > { %p3255_p1 = por %p3254_p11, %p3253_p10 }
 0x2d2   : > { %p3251_p5 = pneg %p3250_p0 }
 0x2d4   : > { %p3256_p4 = pnand %p3255_p1, %p3251_p5 }
 0x2d6   : > { %3259 = shalt.err (!%p3256_p4)
}
 0x2d7   : > { %s3339_s27 = smov 256   ;;  %s3340_s29 = smov 16  }
 0x2d8   : > { %3039 = dma.vmem_to_hbm [thread:$0]  (%p3470_p3), %s4261_s20, 768, %s4258_s24, %s2652_s11, %s3339_s27, %s3339_s27, %s3340_s29  }
 0x2d9 PF: > { %s4344_s18 = sld [smem:[#allocation16_spill]]  ;;  %p4346_p8 = scmp.ge.s32.totalorder %s3326_s26, 2 }
 0x2db   : > { %p3056_p7 = pnand %p4346_p8, %p3421_p6 }
 0x2dd   : > { %p3057_p2 = pneg %p3056_p7 }
 0x2df   : > { %s2683_s14 = sand.u32 1, %s4344_s18  }
 0x2e0   : > { %s2684_s12 = scalar_lea.sflag [#allocation4], %s2683_s14 }
 0x2e1   : > { %3301 = dma.done.wait (%p3057_p2), %s2684_s12, 768  }
 0x2e2   : > { %3303 = vsyncadd (%p3057_p2), %s2684_s12, 4294966528  ;;  %s26_s26 = sadd.s32 1, %s3326_s26   ;;  %s4347_s19 = sld [smem:[#allocation17_spill]] }
 0x2e3   : > { %p23_p9 = scmp.ge.s32.totalorder %s26_s26, 4   ;;  %s4348_s23 = sld [smem:[#allocation20_spill]] }
 0x2e4   : > { %s4349_s13 = sld [smem:[#allocation19_spill]]  ;;  %s4350_s21 = smov %s3310_s22 }
 0x2e5   : > { %s4352_s24 = smov %s3322_s25 }
 0x2e6   :  { %25 = sbr.rel (!%p23_p9) target bundleno = 13 (0xd), region = 122 }
 0x2e8   : > { %s4351_s22 = smov %s4347_s19 }
 0x2ea   : > { %s4353_s25 = smov %s4349_s13 }
 0x2eb   :  { %2689 = vsyncpa [#allocation3], 1 }
 0x2ec   :  { %2691 = vsyncpa [#allocation3 + $0x1], 1 }
 0x2ed   :  { %2692 = vsyncpa [#allocation6], 1 }
 0x2ee   :  { %2694 = vsyncpa [#allocation6 + $0x1], 1 }
 0x2ef   :  { %2695 = vsyncpa [#allocation9], 1 }
 0x2f0   :  { %2696 = vsyncpa [#allocation4], 1 }
 0x2f1   :  { %2698 = vsyncpa [#allocation4 + $0x1], 1 }

</bundles_post_ra>
